<compile_context>
chip_gen: v5e
topology: v5e:2x2
jax: 0.10.0
libtpu: 0.0.40
codegen_flags: <defaults>
</compile_context>

<pallas_src>
import functools

import jax
import jax.numpy as jnp
from jax import lax
from jax.experimental import pallas as pl
from jax.experimental.pallas import tpu as pltpu


# ----------------------------- pass 1 kernel ---------------------------------
# conv3x3 (bf16 im2col, f32 accumulation) + fused conv-bias/BatchNorm(eval)
# + ReLU, plus a per-tile channel sum for the global average pool.
def dem_conv_kernel(xt_ref, wconv_ref, scale_ref, bias_ref, out_ref, sum_ref):
    _, TH, W, C = out_ref.shape
    xt = xt_ref[0, 0]                                    # (TH+2, W+2, C) bf16

    # 3 sublane-shifted builds (one per kw tap); kh offsets are pure row
    # slices of those (address-only).  Tap order: kh-major, kw, then cin,
    # matching the (9C, C) weight layout built in the wrapper.
    xws = [xt[:, kw:kw + W, :] for kw in range(3)]       # each (TH+2, W, C)
    cols = [xws[kw][kh:kh + TH] for kh in range(3) for kw in range(3)]

    if C >= 128:
        # Nine accumulating matmuls: K = C >= 128 keeps the MXU busy and
        # avoids the (TH*W, 9C) patch buffer (largest VMEM consumer).
        acc = jnp.zeros((TH * W, C), jnp.float32)
        for tap, col in enumerate(cols):
            acc = acc + jnp.dot(col.reshape(TH * W, C),
                                wconv_ref[tap * C:(tap + 1) * C, :],
                                preferred_element_type=jnp.float32)
    else:
        # Single im2col matmul with K = 9C, built natively in bf16.
        patches = jnp.concatenate(cols, axis=-1).reshape(TH * W, 9 * C)
        acc = jnp.dot(patches, wconv_ref[...],
                      preferred_element_type=jnp.float32)

    out = jnp.maximum(acc * scale_ref[...] + bias_ref[...], 0.0)     # f32

    sum_ref[0, 0] = jnp.sum(out, axis=0, keepdims=True)              # (1, C)
    out_ref[...] = out.reshape(1, TH, W, C).astype(out_ref.dtype)    # bf16


# ----------------------------- pass 2 kernel ---------------------------------
# out + out * attention == out * (1 + attention), applied on lane-dense
# (1, TH, W*C) blocks; the (1 + attention) row is pre-tiled by the wrapper.
def dem_recal_kernel(y_ref, recal_ref, o_ref):
    o_ref[...] = y_ref[...].astype(jnp.float32) * recal_ref[...]


# ------------------------------ sizing helpers --------------------------------
def _round_up(x, m):
    return ((x + m - 1) // m) * m


def _vmem_capacity_bytes():
    try:
        return int(pltpu.get_tpu_info().vmem_capacity_bytes)
    except Exception:
        return 64 * 1024 * 1024            # conservative: v7x per-core VMEM


def _est_p1_bytes(TH, W, C):
    lc = _round_up(C, 128)                                # lane padding, C<128
    itile = (TH + 2) * _round_up(W + 2, 8) * lc * 2       # bf16 input tile
    shifted = 3 * (TH + 2) * W * lc * 2                   # kw-shifted builds
    patches = TH * W * _round_up(9 * C, 128) * 2 if C < 128 else 0
    acc = TH * W * lc * 4                                 # f32 acc + BN/ReLU
    obuf = TH * _round_up(W, 8) * lc * 2                  # bf16 out block
    const = 9 * C * _round_up(C, 128) * 2 + 8 * lc * 4    # weight + scale/bias
    return 2 * itile + shifted + patches + 2 * acc + 2 * obuf + 2 * const


def _est_p2_bytes(TH, W, C):
    wc = _round_up(W * C, 128)
    return 2 * TH * wc * 2 + 2 * TH * wc * 4 + 2 * wc * 4


def _pick_tile_h(B, H, W, C, budget, block_h):
    if block_h is not None and H % block_h == 0:
        return block_h
    cands = [c for c in (512, 256, 128, 64, 32, 16, 8) if H % c == 0]
    fitting = [c for c in cands if 2 * _est_p1_bytes(c, W, C) <= budget]
    pool = fitting if fitting else cands
    if not pool:
        # TODO(synk): remainder-tile path for large H not divisible by 8.
        return H
    th = pool[0]
    # Keep >= 2 grid steps so both v7x TensorCores get work.
    if B * (H // th) < 2:
        for c in pool:
            if B * (H // c) >= 2:
                th = c
                break
    return th


# ------------------------------- wrapper --------------------------------------
def dem_forward(x_nchw, params, eps=1e-5, block_h=None):
    B, C, H, W = x_nchw.shape
    budget = (_vmem_capacity_bytes() * 3) // 4
    TH = _pick_tile_h(B, H, W, C, budget, block_h)
    nT = H // TH

    # ---- layout, reflect padding and halo tiling (bf16, pure data movement) --
    x = jnp.transpose(x_nchw, (0, 2, 3, 1)).astype(jnp.bfloat16)       # NHWC
    xpad = jnp.pad(x, ((0, 0), (1, 1), (1, 1), (0, 0)), mode="reflect")
    xtiles = jnp.stack([xpad[:, t * TH:t * TH + TH + 2] for t in range(nT)],
                       axis=1)                      # (B, nT, TH+2, W+2, C) bf16

    # ---- fold conv bias + BatchNorm(eval) into per-channel scale/bias ----
    s = params["bn_gamma"] / jnp.sqrt(params["bn_var"] + eps)
    scale = s.reshape(1, C).astype(jnp.float32)
    bias = (params["conv_b"] * s + params["bn_beta"]
            - params["bn_mean"] * s).reshape(1, C).astype(jnp.float32)

    # conv weight OIHW -> (kh, kw, Cin, Cout) -> (9*Cin, Cout), bf16 for the MXU.
    wconv = jnp.transpose(params["conv_w"], (2, 3, 1, 0)).reshape(9 * C, C)
    wconv = wconv.astype(jnp.bfloat16)

    def _limit(n):
        return int(min(budget, max(8 * 1024 * 1024, 2 * n)))

    # ---- pass 1: conv3x3 + BN + ReLU (bf16 out) + per-tile channel sums ----
    out_bn, part_sums = pl.pallas_call(
        dem_conv_kernel,
        out_shape=(jax.ShapeDtypeStruct((B, H, W, C), jnp.bfloat16),
                   jax.ShapeDtypeStruct((B, nT, 1, C), jnp.float32)),
        grid=(B, nT),
        in_specs=[
            pl.BlockSpec((1, 1, TH + 2, W + 2, C), lambda b, t: (b, t, 0, 0, 0)),
            pl.BlockSpec((9 * C, C), lambda b, t: (0, 0)),
            pl.BlockSpec((1, C), lambda b, t: (0, 0)),
            pl.BlockSpec((1, C), lambda b, t: (0, 0)),
        ],
        out_specs=(
            pl.BlockSpec((1, TH, W, C), lambda b, t: (b, t, 0, 0)),
            pl.BlockSpec((1, 1, 1, C), lambda b, t: (b, t, 0, 0)),
        ),
        compiler_params=pltpu.CompilerParams(
            dimension_semantics=("parallel", "parallel"),
            vmem_limit_bytes=_limit(_est_p1_bytes(TH, W, C))),
    )(xtiles, wconv, scale, bias)

    # ---- squeeze-excite attention, hoisted out of the per-tile kernel ----
    w1 = params["fc1_w"][:, :, 0, 0].T.astype(jnp.float32)   # (Cin, Cout)
    b1 = params["fc1_b"].reshape(1, C).astype(jnp.float32)
    w2 = params["fc2_w"][:, :, 0, 0].T.astype(jnp.float32)
    b2 = params["fc2_b"].reshape(1, C).astype(jnp.float32)

    pooled = jnp.sum(part_sums[:, :, 0, :], axis=1) / float(H * W)    # (B, C)
    h1 = jnp.maximum(pooled @ w1 + b1, 0.0)
    att = jax.nn.sigmoid(h1 @ w2 + b2)                                # (B, C)
    # Pre-tile (1 + attention) to the lane-dense (W*C) layout used by pass 2.
    recal = (1.0 + jnp.tile(att, (1, W))).reshape(B, 1, W * C)
    recal = recal.astype(jnp.float32)

    # ---- pass 2: out * (1 + attention), fully lane-dense blocks ----
    out_dense = out_bn.reshape(B, H, W * C)    # free row-major reshape in XLA
    out_flat = pl.pallas_call(
        dem_recal_kernel,
        out_shape=jax.ShapeDtypeStruct((B, H, W * C), jnp.float32),
        grid=(B, nT),
        in_specs=[
            pl.BlockSpec((1, TH, W * C), lambda b, t: (b, t, 0)),
            pl.BlockSpec((1, 1, W * C), lambda b, t: (b, 0, 0)),
        ],
        out_specs=pl.BlockSpec((1, TH, W * C), lambda b, t: (b, t, 0)),
        compiler_params=pltpu.CompilerParams(
            dimension_semantics=("parallel", "parallel"),
            vmem_limit_bytes=_limit(_est_p2_bytes(TH, W, C))),
    )(out_dense, recal)

    out_nhwc = out_flat.reshape(B, H, W, C)
    return jnp.transpose(out_nhwc, (0, 3, 1, 2))           # back to NCHW


# ------------------------------ reference -------------------------------------
def dem_reference(x_nchw, params, eps=1e-5):
    """Pure-JAX f32 reference (lax conv) mirroring the PyTorch forward."""
    dn = ("NCHW", "OIHW", "NCHW")
    xpad = jnp.pad(x_nchw, ((0, 0), (0, 0), (1, 1), (1, 1)), mode="reflect")
    conv = lax.conv_general_dilated(xpad, params["conv_w"], (1, 1), "VALID",
                                    dimension_numbers=dn)
    conv = conv + params["conv_b"][None, :, None, None]
    s = params["bn_gamma"] / jnp.sqrt(params["bn_var"] + eps)
    out = (conv - params["bn_mean"][None, :, None, None]) * s[None, :, None, None] \
        + params["bn_beta"][None, :, None, None]
    out = jnp.maximum(out, 0.0)
    pooled = jnp.mean(out, axis=(2, 3), keepdims=True)
    h1 = lax.conv_general_dilated(pooled, params["fc1_w"], (1, 1), "VALID",
                                  dimension_numbers=dn) + params["fc1_b"][None, :, None, None]
    h1 = jnp.maximum(h1, 0.0)
    att = jax.nn.sigmoid(
        lax.conv_general_dilated(h1, params["fc2_w"], (1, 1), "VALID",
                                 dimension_numbers=dn)
        + params["fc2_b"][None, :, None, None])
    return out + out * att


def init_params(key, C):
    ks = jax.random.split(key, 8)
    return {
        "conv_w": 0.1 * jax.random.normal(ks[0], (C, C, 3, 3), jnp.float32),
        "conv_b": 0.1 * jax.random.normal(ks[1], (C,), jnp.float32),
        "bn_gamma": 1.0 + 0.1 * jax.random.normal(ks[2], (C,), jnp.float32),
        "bn_beta": 0.1 * jax.random.normal(ks[3], (C,), jnp.float32),
        "bn_mean": 0.1 * jax.random.normal(ks[4], (C,), jnp.float32),
        "bn_var": jnp.abs(1.0 + 0.1 * jax.random.normal(ks[5], (C,), jnp.float32)),
        "fc1_w": 0.1 * jax.random.normal(ks[6], (C, C, 1, 1), jnp.float32),
        "fc1_b": jnp.zeros((C,), jnp.float32),
        "fc2_w": 0.1 * jax.random.normal(ks[7], (C, C, 1, 1), jnp.float32),
        "fc2_b": jnp.zeros((C,), jnp.float32),
    }


if __name__ == "__main__":
    B, C, H, W = 2, 8, 32, 16
    key = jax.random.PRNGKey(0)
    kx, kp = jax.random.split(key)
    x = jax.random.normal(kx, (B, C, H, W), jnp.float32)
    params = init_params(kp, C)

    # block_h=16 -> 2 row-tiles per image, exercising the halo tiling + 2 passes.
    fwd = jax.jit(functools.partial(dem_forward, block_h=16))
    out = jax.block_until_ready(fwd(x, params))
    ref = jax.block_until_ready(dem_reference(x, params))

    assert out.shape == (B, C, H, W)
    max_diff = float(jnp.max(jnp.abs(out - ref)))
    # bf16 activations/weights + bf16 intermediate with f32 accumulation ->
    # slightly looser tolerance than a pure-f32 path.
    assert jnp.allclose(out, ref, rtol=2e-2, atol=2e-2), \
        f"max abs diff {max_diff}"
    print("KERNEL_OK")
</pallas_src>

<mosaic_0001>
module attributes {stable_mosaic.version = 11 : i64} {
  func.func @dem_conv_kernel(%arg0: i32, %arg1: i32, %arg2: memref<1x1x18x18x8xbf16, #tpu.memory_space<vmem>>, %arg3: memref<72x8xbf16, #tpu.memory_space<vmem>>, %arg4: memref<1x8xf32, #tpu.memory_space<vmem>>, %arg5: memref<1x8xf32, #tpu.memory_space<vmem>>, %arg6: memref<1x16x16x8xbf16, #tpu.memory_space<vmem>>, %arg7: memref<1x1x1x8xf32, #tpu.memory_space<vmem>>) attributes {dimension_semantics = [#tpu.dimension_semantics<parallel>, #tpu.dimension_semantics<parallel>], iteration_bounds = array<i64: 2, 2>, scalar_prefetch = 0 : i64, scratch_operands = 0 : i64, tpu.core_type = #tpu.core_type<tc>, window_params = [{transform_indices = @transform_0, window_bounds = array<i64: 1, 1, 18, 18, 8>}, {pipeline_mode = #tpu.pipeline_mode<synchronous>, transform_indices = @transform_1, window_bounds = array<i64: 72, 8>}, {pipeline_mode = #tpu.pipeline_mode<synchronous>, transform_indices = @transform_2, window_bounds = array<i64: 1, 8>}, {pipeline_mode = #tpu.pipeline_mode<synchronous>, transform_indices = @transform_3, window_bounds = array<i64: 1, 8>}, {transform_indices = @transform_4, window_bounds = array<i64: 1, 16, 16, 8>}, {transform_indices = @transform_5, window_bounds = array<i64: 1, 1, 1, 8>}]} {
    %c0 = arith.constant 0 : index
    %c0_0 = arith.constant 0 : index
    %c0_1 = arith.constant 0 : index
    %c0_2 = arith.constant 0 : index
    %c0_3 = arith.constant 0 : index
    %0 = vector.load %arg2[%c0, %c0_0, %c0_1, %c0_2, %c0_3] : memref<1x1x18x18x8xbf16, #tpu.memory_space<vmem>>, vector<1x1x18x18x8xbf16>
    %1 = vector.shape_cast %0 : vector<1x1x18x18x8xbf16> to vector<18x18x8xbf16>
    %2 = vector.extract_strided_slice %1 {offsets = [0, 0, 0], sizes = [18, 16, 8], strides = [1, 1, 1]} : vector<18x18x8xbf16> to vector<18x16x8xbf16>
    %3 = vector.extract_strided_slice %1 {offsets = [0, 1, 0], sizes = [18, 16, 8], strides = [1, 1, 1]} : vector<18x18x8xbf16> to vector<18x16x8xbf16>
    %4 = vector.extract_strided_slice %1 {offsets = [0, 2, 0], sizes = [18, 16, 8], strides = [1, 1, 1]} : vector<18x18x8xbf16> to vector<18x16x8xbf16>
    %5 = vector.extract_strided_slice %2 {offsets = [0, 0, 0], sizes = [16, 16, 8], strides = [1, 1, 1]} : vector<18x16x8xbf16> to vector<16x16x8xbf16>
    %6 = vector.extract_strided_slice %3 {offsets = [0, 0, 0], sizes = [16, 16, 8], strides = [1, 1, 1]} : vector<18x16x8xbf16> to vector<16x16x8xbf16>
    %7 = vector.extract_strided_slice %4 {offsets = [0, 0, 0], sizes = [16, 16, 8], strides = [1, 1, 1]} : vector<18x16x8xbf16> to vector<16x16x8xbf16>
    %8 = vector.extract_strided_slice %2 {offsets = [1, 0, 0], sizes = [16, 16, 8], strides = [1, 1, 1]} : vector<18x16x8xbf16> to vector<16x16x8xbf16>
    %9 = vector.extract_strided_slice %3 {offsets = [1, 0, 0], sizes = [16, 16, 8], strides = [1, 1, 1]} : vector<18x16x8xbf16> to vector<16x16x8xbf16>
    %10 = vector.extract_strided_slice %4 {offsets = [1, 0, 0], sizes = [16, 16, 8], strides = [1, 1, 1]} : vector<18x16x8xbf16> to vector<16x16x8xbf16>
    %11 = vector.extract_strided_slice %2 {offsets = [2, 0, 0], sizes = [16, 16, 8], strides = [1, 1, 1]} : vector<18x16x8xbf16> to vector<16x16x8xbf16>
    %12 = vector.extract_strided_slice %3 {offsets = [2, 0, 0], sizes = [16, 16, 8], strides = [1, 1, 1]} : vector<18x16x8xbf16> to vector<16x16x8xbf16>
    %13 = vector.extract_strided_slice %4 {offsets = [2, 0, 0], sizes = [16, 16, 8], strides = [1, 1, 1]} : vector<18x16x8xbf16> to vector<16x16x8xbf16>
    %14 = tpu.concatenate %5, %6, %7, %8, %9, %10, %11, %12, %13 in 2 : vector<16x16x8xbf16>, vector<16x16x8xbf16>, vector<16x16x8xbf16>, vector<16x16x8xbf16>, vector<16x16x8xbf16>, vector<16x16x8xbf16>, vector<16x16x8xbf16>, vector<16x16x8xbf16>, vector<16x16x8xbf16> -> vector<16x16x72xbf16>
    %15 = vector.shape_cast %14 : vector<16x16x72xbf16> to vector<256x72xbf16>
    %c0_4 = arith.constant 0 : index
    %c0_5 = arith.constant 0 : index
    %16 = vector.load %arg3[%c0_4, %c0_5] : memref<72x8xbf16, #tpu.memory_space<vmem>>, vector<72x8xbf16>
    %cst = arith.constant dense<0.000000e+00> : vector<256x8xf32>
    %17 = tpu.matmul %15, %16, %cst {dimension_numbers = #tpu.dot_dimension_numbers<[1], [0], [0], [1], [0, 0, 1, 1], [], []>} : vector<256x72xbf16>, vector<72x8xbf16>, vector<256x8xf32> -> vector<256x8xf32>
    %c0_6 = arith.constant 0 : index
    %c0_7 = arith.constant 0 : index
    %18 = vector.load %arg4[%c0_6, %c0_7] : memref<1x8xf32, #tpu.memory_space<vmem>>, vector<1x8xf32>
    %19 = vector.broadcast %18 : vector<1x8xf32> to vector<256x8xf32>
    %20 = arith.mulf %17, %19 : vector<256x8xf32>
    %c0_8 = arith.constant 0 : index
    %c0_9 = arith.constant 0 : index
    %21 = vector.load %arg5[%c0_8, %c0_9] : memref<1x8xf32, #tpu.memory_space<vmem>>, vector<1x8xf32>
    %22 = vector.broadcast %21 : vector<1x8xf32> to vector<256x8xf32>
    %23 = arith.addf %20, %22 : vector<256x8xf32>
    %cst_10 = arith.constant 0.000000e+00 : f32
    %24 = vector.broadcast %cst_10 : f32 to vector<256x8xf32>
    %25 = arith.maximumf %23, %24 : vector<256x8xf32>
    %cst_11 = arith.constant dense<0.000000e+00> : vector<8xf32>
    %26 = vector.multi_reduction <add>, %25, %cst_11 [0] : vector<256x8xf32> to vector<8xf32>
    %27 = vector.shape_cast %26 : vector<8xf32> to vector<1x8xf32>
    %c0_12 = arith.constant 0 : index
    %c0_13 = arith.constant 0 : index
    %c0_14 = arith.constant 0 : index
    %c0_15 = arith.constant 0 : index
    %28 = vector.load %arg7[%c0_12, %c0_13, %c0_14, %c0_15] : memref<1x1x1x8xf32, #tpu.memory_space<vmem>>, vector<1x1x1x8xf32>
    %29 = vector.shape_cast %28 : vector<1x1x1x8xf32> to vector<1x8xf32>
    %30 = vector.shape_cast %27 : vector<1x8xf32> to vector<1x1x1x8xf32>
    tpu.vector_store %arg7[%c0_12, %c0_13, %c0_14, %c0_15], %30 {strides = array<i32>} : memref<1x1x1x8xf32, #tpu.memory_space<vmem>>, vector<1x1x1x8xf32>,
    %31 = vector.shape_cast %25 : vector<256x8xf32> to vector<1x16x16x8xf32>
    %32 = arith.truncf %31 : vector<1x16x16x8xf32> to vector<1x16x16x8xbf16>
    %c0_16 = arith.constant 0 : index
    %c0_17 = arith.constant 0 : index
    %c0_18 = arith.constant 0 : index
    %c0_19 = arith.constant 0 : index
    %33 = vector.load %arg6[%c0_16, %c0_17, %c0_18, %c0_19] : memref<1x16x16x8xbf16, #tpu.memory_space<vmem>>, vector<1x16x16x8xbf16>
    tpu.vector_store %arg6[%c0_16, %c0_17, %c0_18, %c0_19], %32 {strides = array<i32>} : memref<1x16x16x8xbf16, #tpu.memory_space<vmem>>, vector<1x16x16x8xbf16>,
    return
  }
  func.func @transform_0(%arg0: i32, %arg1: i32) -> (i32, i32, i32, i32, i32) {
    %c0_i32 = arith.constant 0 : i32
    %c0_i32_0 = arith.constant 0 : i32
    %c0_i32_1 = arith.constant 0 : i32
    %c0_i32_2 = arith.constant 0 : i32
    return %arg0, %arg1, %c0_i32, %c0_i32_0, %c0_i32_1 : i32, i32, i32, i32, i32
  }
  func.func @transform_1(%arg0: i32, %arg1: i32) -> (i32, i32) {
    %c0_i32 = arith.constant 0 : i32
    %c0_i32_0 = arith.constant 0 : i32
    %c0_i32_1 = arith.constant 0 : i32
    return %c0_i32, %c0_i32_0 : i32, i32
  }
  func.func @transform_2(%arg0: i32, %arg1: i32) -> (i32, i32) {
    %c0_i32 = arith.constant 0 : i32
    %c0_i32_0 = arith.constant 0 : i32
    %c0_i32_1 = arith.constant 0 : i32
    return %c0_i32, %c0_i32_0 : i32, i32
  }
  func.func @transform_3(%arg0: i32, %arg1: i32) -> (i32, i32) {
    %c0_i32 = arith.constant 0 : i32
    %c0_i32_0 = arith.constant 0 : i32
    %c0_i32_1 = arith.constant 0 : i32
    return %c0_i32, %c0_i32_0 : i32, i32
  }
  func.func @transform_4(%arg0: i32, %arg1: i32) -> (i32, i32, i32, i32) {
    %c0_i32 = arith.constant 0 : i32
    %c0_i32_0 = arith.constant 0 : i32
    %c0_i32_1 = arith.constant 0 : i32
    return %arg0, %arg1, %c0_i32, %c0_i32_0 : i32, i32, i32, i32
  }
  func.func @transform_5(%arg0: i32, %arg1: i32) -> (i32, i32, i32, i32) {
    %c0_i32 = arith.constant 0 : i32
    %c0_i32_0 = arith.constant 0 : i32
    %c0_i32_1 = arith.constant 0 : i32
    return %arg0, %arg1, %c0_i32, %c0_i32_0 : i32, i32, i32, i32
  }
}

module attributes {stable_mosaic.version = 11 : i64} {
  func.func @dem_recal_kernel(%arg0: i32, %arg1: i32, %arg2: memref<1x16x128xbf16, #tpu.memory_space<vmem>>, %arg3: memref<1x1x128xf32, #tpu.memory_space<vmem>>, %arg4: memref<1x16x128xf32, #tpu.memory_space<vmem>>) attributes {dimension_semantics = [#tpu.dimension_semantics<parallel>, #tpu.dimension_semantics<parallel>], iteration_bounds = array<i64: 2, 2>, scalar_prefetch = 0 : i64, scratch_operands = 0 : i64, tpu.core_type = #tpu.core_type<tc>, window_params = [{transform_indices = @transform_0, window_bounds = array<i64: 1, 16, 128>}, {transform_indices = @transform_1, window_bounds = array<i64: 1, 1, 128>}, {transform_indices = @transform_2, window_bounds = array<i64: 1, 16, 128>}]} {
    %c0 = arith.constant 0 : index
    %c0_0 = arith.constant 0 : index
    %c0_1 = arith.constant 0 : index
    %0 = vector.load %arg2[%c0, %c0_0, %c0_1] : memref<1x16x128xbf16, #tpu.memory_space<vmem>>, vector<1x16x128xbf16>
    %1 = arith.extf %0 : vector<1x16x128xbf16> to vector<1x16x128xf32>
    %c0_2 = arith.constant 0 : index
    %c0_3 = arith.constant 0 : index
    %c0_4 = arith.constant 0 : index
    %2 = vector.load %arg3[%c0_2, %c0_3, %c0_4] : memref<1x1x128xf32, #tpu.memory_space<vmem>>, vector<1x1x128xf32>
    %3 = vector.broadcast %2 : vector<1x1x128xf32> to vector<1x16x128xf32>
    %4 = arith.mulf %1, %3 : vector<1x16x128xf32>
    %c0_5 = arith.constant 0 : index
    %c0_6 = arith.constant 0 : index
    %c0_7 = arith.constant 0 : index
    %5 = vector.load %arg4[%c0_5, %c0_6, %c0_7] : memref<1x16x128xf32, #tpu.memory_space<vmem>>, vector<1x16x128xf32>
    tpu.vector_store %arg4[%c0_5, %c0_6, %c0_7], %4 {strides = array<i32>} : memref<1x16x128xf32, #tpu.memory_space<vmem>>, vector<1x16x128xf32>,
    return
  }
  func.func @transform_0(%arg0: i32, %arg1: i32) -> (i32, i32, i32) {
    %c0_i32 = arith.constant 0 : i32
    %c0_i32_0 = arith.constant 0 : i32
    return %arg0, %arg1, %c0_i32 : i32, i32, i32
  }
  func.func @transform_1(%arg0: i32, %arg1: i32) -> (i32, i32, i32) {
    %c0_i32 = arith.constant 0 : i32
    %c0_i32_0 = arith.constant 0 : i32
    %c0_i32_1 = arith.constant 0 : i32
    return %arg0, %c0_i32, %c0_i32_0 : i32, i32, i32
  }
  func.func @transform_2(%arg0: i32, %arg1: i32) -> (i32, i32, i32) {
    %c0_i32 = arith.constant 0 : i32
    %c0_i32_0 = arith.constant 0 : i32
    return %arg0, %arg1, %c0_i32 : i32, i32, i32
  }
}

</mosaic_0001>

<bundles_post_ra>
// kernel: dem_forward.3
= control target key start
LH: loop header
LB: loop body
LE: loop exit
PB: predicated region body
PF: predicated region fallthrough
CT: control target
= control target key end

     0   :  { %s421_s9 = smov 0   ;;  %s423_s10 = smov 0   ;;  %s472_s0 = inlined_call_operand.vmem [shape: bf16[2,32,128], index: 0, kind: input, shape index: {}]   ;;  %s473_s1 = inlined_call_operand.vmem [shape: f32[2,1,128], index: 1, kind: input, shape index: {}]   ;;  %s474_s2 = inlined_call_operand.vmem [shape: f32[2,32,128], index: 2, kind: output, shape index: {}]  }
   0x1   :  { %s425_s11 = smov 0   ;;  %s427_s12 = smov 0  }
   0x2   :  { %s429_s13 = smov 0  }
   0x3 LB: > { %s21_s14 = sadd.s32 1, %s396_s11  ;;  %s24_s15 = sadd.s32 1, %s400_s12  ;;  %s404_s13 = sphi %s429_s13, %s12_s13   ;;  %s400_s12 = sphi %s427_s12, %s478_s12   ;;  %s396_s11 = sphi %s425_s11, %s477_s11   ;;  %s392_s10 = sphi %s423_s10, %s476_s10   ;;  %s388_s9 = sphi %s421_s9, %s475_s9  }
   0x4   : > { %p22_p0 = scmp.ge.s32.totalorder %s21_s14, 2  ;;  %p312_p1 = scmp.ge.s32.totalorder %s404_s13, 1 }
   0x5   : > { %p141_p2 = scmp.lt.s32.totalorder %s404_s13, 5 }
   0x6   : > { %s480_s14 = smov (%p22_p0, %s21_s14), 0  ;;  %s482_s15 = smov (!%p22_p0, %s24_s15), %s400_s12 }
   0x7   : > { %p142_p3 = pnand %p312_p1, %p141_p2  ;;  %p26_p4 = scmp.ge.s32.totalorder %s482_s15, 2 }
   0x8   : > { %s313_s16 = sshll.u32 (!%p142_p3), %s388_s9, 1  ;;  %p175_p5 = scmp.lt.s32.totalorder (!%p142_p3), %s392_s10, 1 }
   0x9   : > { %s484_s15 = smov (%p26_p4, %s482_s15), 0  ;;  %145 = sbr.rel (%p142_p3) target bundleno = 26 (0x1a), region = 28 }
   0xa   : > { %p177_p6 = scmp.lt.s32.totalorder (!%p142_p3), %s313_s16, 3 }
   0xe   : > { %s486_s10 = smov (!%p175_p5, %s392_s10), 1  ;;  %s488_s16 = smov (!%p177_p6, %s313_s16), 3 }
   0xf   : > { %s314_s17 = sshll.u32 %s486_s10, 2  ;;  %s186_s20 = scalar_lea.vmem %s473_s1, %s486_s10 }
  0x10   : > { %s180_s21 = sadd.s32 %s314_s17, %s488_s16  ;;  %v365_v0 = vld [vmem:[%s186_s20] ss:$0 sm:$0xff] }
  0x11   : > { %s315_s22 = sshll.u32 %s180_s21, 2  ;;  %s318_s26 = sshll.u32 %s180_s21, 3 }
  0x12   : > { %s182_s25 = scalar_lea.vmem %s472_s0, %s315_s22  ;;  %s195_s29 = scalar_lea.vmem %s474_s2, %s318_s26 }
  0x13   : > { %v322_v1 = vld [vmem:[%s182_s25] sm:$0xff]  }
  0x14   : > { %v323_v2 = vunpack.c.l.bf16 %v322_v1  ;;  %v324_v3 = vunpack.c.h.bf16 %v322_v1 }
  0x16   : > { %v205_v4 = vmul.f32 %v365_v0, %v323_v2  ;;  %v206_v5 = vmul.f32 %v365_v0, %v324_v3 }
  0x18   : > { %207 = vst [vmem:[%s195_s29] sm:$0xff] %v205_v4 }
  0x19   : > { %208 = vst [vmem:[%s195_s29 + $0x8] sm:$0xff] %v206_v5 }
  0x1a PF: > { %s12_s13 = sadd.s32 1, %s404_s13   ;;  %s475_s9 = smov %s396_s11 }
  0x1b   : > { %p9_p7 = scmp.ge.s32.totalorder %s12_s13, 6   ;;  %s476_s10 = smov %s400_s12 }
  0x1c   : > { %s477_s11 = smov %s480_s14  ;;  %s478_s12 = smov %s484_s15 }
  0x1d   :  { %11 = sbr.rel (!%p9_p7) target bundleno = 3 (0x3), region = 61 }

// kernel: dem_forward.2
= control target key start
LH: loop header
LB: loop body
LE: loop exit
PB: predicated region body
PF: predicated region fallthrough
CT: control target
= control target key end

     0   :  { %s2102_s18 = smov 0   ;;  %s2104_s19 = smov 0   ;;  %s3178_s0 = inlined_call_operand.vmem [shape: bf16[2,2,18,18,8], index: 0, kind: input, shape index: {}]   ;;  %s3179_s1 = inlined_call_operand.vmem [shape: bf16[72,8], index: 1, kind: input, shape index: {}]   ;;  %s3180_s2 = inlined_call_operand.vmem [shape: f32[1,8], index: 2, kind: input, shape index: {}]   ;;  %s3181_s3 = inlined_call_operand.vmem [shape: f32[1,8], index: 3, kind: input, shape index: {}]   ;;  %s3182_s4 = inlined_call_operand.vmem [shape: bf16[2,32,16,8], index: 4, kind: output, shape index: {0}]   ;;  %s3183_s5 = inlined_call_operand.vmem [shape: f32[2,2,1,8], index: 5, kind: output, shape index: {1}]  }
   0x1   :  { %s2106_s20 = smov 0   ;;  %s2108_s21 = smov 0  }
   0x2   :  { %s2110_s22 = smov 0  }
   0x3 LB: > { %s25_s23 = sadd.s32 1, %s2054_s20  ;;  %s28_s24 = sadd.s32 1, %s2058_s21  ;;  %s2062_s22 = sphi %s2110_s22, %s16_s22   ;;  %s2058_s21 = sphi %s2108_s21, %s3187_s21   ;;  %s2054_s20 = sphi %s2106_s20, %s3186_s20   ;;  %s2050_s19 = sphi %s2104_s19, %s3185_s19   ;;  %s2046_s18 = sphi %s2102_s18, %s3184_s18  }
   0x4   : > { %p26_p0 = scmp.ge.s32.totalorder %s25_s23, 2  ;;  %p1820_p1 = scmp.ge.s32.totalorder %s2062_s22, 1 }
   0x5   : > { %p212_p2 = scmp.lt.s32.totalorder %s2062_s22, 5 }
   0x6   : > { %s3189_s23 = smov (%p26_p0, %s25_s23), 0  ;;  %s3191_s24 = smov (!%p26_p0, %s28_s24), %s2058_s21 }
   0x7   : > { %p213_p3 = pnand %p1820_p1, %p212_p2  ;;  %p30_p4 = scmp.ge.s32.totalorder %s3191_s24, 2 }
   0x8   : > { %p256_p5 = scmp.lt.s32.totalorder (!%p213_p3), %s2050_s19, 1  ;;  %p258_p6 = scmp.lt.s32.totalorder (!%p213_p3), %s2046_s18, 1 }
   0x9   : > { %s3193_s24 = smov (%p30_p4, %s3191_s24), 0  ;;  %216 = sbr.rel (%p213_p3) target bundleno = 648 (0x288), region = 36 }
   0xa   : > { %s2064_s8 = smov (!%p213_p3), 8   ;;  %s2065_s9 = smov (!%p213_p3), 16  }
   0xb   : > { %s2066_s10 = smov (!%p213_p3), 40   ;;  %s2067_s11 = smov (!%p213_p3), 32  }
   0xc   : > { %s2068_s12 = smov (!%p213_p3), 24   ;;  %s2069_s13 = smov (!%p213_p3), 64  }
   0xd   : > { %s2070_s14 = smov (!%p213_p3), 56   ;;  %s2071_s15 = smov (!%p213_p3), 48  }
   0xe   : > { %s3195_s19 = smov (!%p256_p5, %s2050_s19), 1  ;;  %vm466_vm0 = vsmask.f32 7424  ;;  %vm691_vm1 = vcmask 1046528   ;;  %vm1043_vm2 = vcmask 130048   ;;  %vm1010_vm3 = vcmask 64512  }
   0xf   : > { %s2138_s25 = scalar_select %p258_p6, %s2046_s18, 1  ;;  %vm1343_vm4 = vcmask 1043456   ;;  %vm1076_vm5 = vcmask 195584   ;;  %vm1109_vm6 = vcmask 261120   ;;  %vm1142_vm7 = vcmask 326656  }
  0x10   : > { %s1971_s26 = smul.u32 108, %s3195_s19  ;;  %vm1175_vm8 = vcmask 392192   ;;  %vm1208_vm9 = vcmask 457728   ;;  %vm1241_vm10 = vcmask 523264   ;;  %vm1310_vm11 = vcmask 588800   ;;  %s1822_s17 = sshll.u32 %s2046_s18, 4 }
  0x11   : > { %s1970_s27 = smul.u32 54, %s2138_s25  ;;  %p268_p7 = scmp.lt.s32.totalorder %s1822_s17, 31  ;;  %vm1643_vm12 = vcmask 60416   ;;  %vm1609_vm13 = vcmask 57344  }
  0x13   : > { %s262_s28 = sadd.s32 %s1971_s26, %s1970_s27  ;;  %s3197_s17 = smov (!%p268_p7, %s1822_s17), 31 }
  0x14   : > { %s1821_s29 = sshll.u32 %s262_s28, 2  ;;  %s1823_s18 = sshll.u32 %s3197_s17, 1 }
  0x15   : > { %s2145_s7 = scalar_lea.vmem %s3178_s0, %s1821_s29 }
  0x16   : > { %v2148_v0 = vld [vmem:[%s2145_s7 + $0x30] sm:$0xff]  ;;  %v298_v1 = vld [vmem:[%s2145_s7 + $0x38] sm:$0x1]  ;;  %v292_v4 = vld [vmem:[%s2145_s7 + $0x20] sm:$0x1] }
  0x17   : > { %v2152_v2 = vld [vmem:[%s2145_s7 + $0x18] sm:$0xff]  ;;  %v438_v3 = vunpack.c.l.b16 %v298_v1  ;;  %v2156_v5 = vld [vmem:[%s2145_s7] sm:$0xff]  ;;  %v286_v6 = vld [vmem:[%s2145_s7 + $0x8] sm:$0x1]  ;;  %v516_v7 = vshrl.u32 %v2148_v0, 16  ;;  %v518_v8 = vshll.u32 %v2148_v0, 16  ;;  %v436_v9 = vunpack.c.l.b16 %v292_v4 }
  0x18   : > { %v492_v10 = vshrl.u32 %v2152_v2, 16  ;;  %v301_v11 = vld [vmem:[%s2145_s7 + $0x44] sm:$0x1]  ;;  %v494_v13 = vshll.u32 %v2152_v2, 16  ;;  %v434_v14 = vunpack.c.l.b16 %v286_v6  ;;  %v468_v15 = vshrl.u32 %v2156_v5, 16  ;;  %v2168_v16 = vld [vmem:[%s2145_s7 + $0x3c] sm:$0xff] }
  0x19   : > { %v2163_v12 = vpack.c.b16 %v438_v3, %v438_v3  ;;  %v520_v17 = vrot.slane %v518_v8, 1  ;;  %v2170_v18 = vpack.c.b16 %v436_v9, %v436_v9  ;;  %v470_v19 = vshll.u32 %v2156_v5, 16  ;;  %v295_v25 = vld [vmem:[%s2145_s7 + $0x2c] sm:$0x1]  ;;  %v2182_v30 = vld [vmem:[%s2145_s7 + $0x24] sm:$0xff]  ;;  %v2215_v59 = vld [vmem:[%s2145_s7 + $0x54] sm:$0xff] }
  0x1a   : > { %v439_v20 = vunpack.c.l.b16 %v301_v11  ;;  %v496_v22 = vrot.slane %v494_v13, 1  ;;  %v2174_v23 = vpack.c.b16 %v434_v14, %v434_v14  ;;  %v528_v24 = vshrl.u32 %v2168_v16, 16  ;;  %v2188_v39 = vld [vmem:[%s2145_s7 + $0xc] sm:$0xff]  ;;  %v289_v40 = vld [vmem:[%s2145_s7 + $0x14] sm:$0x1]  ;;  %v2196_v45 = vld [vmem:[%s2145_s7 + $0x60] sm:$0xff] }
  0x1b   : > { %v523_v21 = vshll.u32 %v2163_v12, 16  ;;  %v521_v26 = vor.u32 %v520_v17, %v516_v7  ;;  %v499_v27 = vshll.u32 %v2170_v18, 16  ;;  %v472_v28 = vrot.slane %v470_v19, 1  ;;  %v310_v46 = vld [vmem:[%s2145_s7 + $0x68] sm:$0x1] }
  0x1c   : > { %v2179_v29 = vpack.c.b16 %v439_v20, %v439_v20  ;;  %v497_v32 = vor.u32 %v496_v22, %v492_v10  ;;  %v475_v33 = vshll.u32 %v2174_v23, 16  ;;  %v530_v34 = vshll.u32 %v2168_v16, 16  ;;  %v307_v60 = vld [vmem:[%s2145_s7 + $0x5c] sm:$0x1]  ;;  %v2228_v8 = vld [vmem:[%s2145_s7 + $0x48] sm:$0xff] }
  0x1d   : > { %v525_v31 = vrot.slane %v523_v21, 1  ;;  %v501_v35 = vrot.slane %v499_v27, 1  ;;  %v473_v36 = vor.u32 %v472_v28, %v468_v15  ;;  %v437_v38 = vunpack.c.l.b16 %v295_v25  ;;  %v304_v9 = vld [vmem:[%s2145_s7 + $0x50] sm:$0x1]  ;;  %v319_v21 = vld [vmem:[%s2145_s7 + $0x8c] sm:$0x1] }
  0x1e   : > { %v535_v37 = vshll.u32 %v2179_v29, 16  ;;  %v477_v42 = vrot.slane %v475_v33, 1  ;;  %v532_v43 = vrot.slane %v530_v34, 1  ;;  %v504_v44 = vshrl.u32 %v2182_v30, 16  ;;  %v2242_v27 = vld [vmem:[%s2145_s7 + $0x84] sm:$0xff]  ;;  %v2249_v34 = vld [vmem:[%s2145_s7 + $0x78] sm:$0xff] }
  0x1f   : > { %v2192_v41 = vsel %vm466_vm0, %v521_v26, %v525_v31  ;;  %v2202_v47 = vsel %vm466_vm0, %v497_v32, %v501_v35  ;;  %v2204_v49 = vpack.c.b16 %v437_v38, %v437_v38  ;;  %v506_v50 = vshll.u32 %v2182_v30, 16 }
  0x20   : > { %667 = vrot.lane.b32.xlu2 %v2192_v41, %s2064_s8  ;;  %v537_v48 = vrot.slane %v535_v37, 1  ;;  %663 = vrot.lane.b32.xlu1 %v2202_v47, %s2064_s8  ;;  %v478_v51 = vsel %vm466_vm0, %v473_v36, %v477_v42  ;;  %v533_v52 = vor.u32 %v532_v43, %v528_v24  ;;  %v435_v53 = vunpack.c.l.b16 %v289_v40  ;;  %v316_v40 = vld [vmem:[%s2145_s7 + $0x80] sm:$0x1] }
  0x21   : > { %v480_v54 = vshrl.u32 %v2188_v39, 16  ;;  %659 = vrot.lane.b32.xlu0 %v478_v51, %s2064_s8  ;;  %v508_v55 = vrot.slane %v506_v50, 1  ;;  %v511_v56 = vshll.u32 %v2204_v49, 16  ;;  %v482_v57 = vshll.u32 %v2188_v39, 16 }
  0x22   : > { %v442_v58 = vunpack.c.l.b16 %v310_v46  ;;  %v2219_v61 = vsel %vm466_vm0, %v533_v52, %v537_v48  ;;  %v2221_v62 = vpack.c.b16 %v435_v53, %v435_v53  ;;  %v564_v63 = vshrl.u32 %v2196_v45, 16  ;;  %v2268_v52 = vld [vmem:[%s2145_s7 + $0x6c] sm:$0xff]  ;;  %v313_v53 = vld [vmem:[%s2145_s7 + $0x74] sm:$0x1] }
  0x23   : > { %v566_v1 = vshll.u32 %v2196_v45, 16  ;;  %v509_v3 = vor.u32 %v508_v55, %v504_v44  ;;  %v513_v4 = vrot.slane %v511_v56, 1  ;;  %v484_v6 = vrot.slane %v482_v57, 1 }
  0x24   : > { %v2225_v7 = vpack.c.b16 %v442_v58, %v442_v58  ;;  %v487_v10 = vshll.u32 %v2221_v62, 16  ;;  %v441_v13 = vunpack.c.l.b16 %v307_v60  ;;  %v552_v14 = vshrl.u32 %v2215_v59, 16  ;;  %v2276_v58 = vld [vmem:[%s2145_s7 + $0xa8] sm:$0xff] }
  0x25   : > { %v568_v11 = vrot.slane %v566_v1, 1  ;;  %v2234_v15 = vsel %vm466_vm0, %v509_v3, %v513_v4  ;;  %v485_v17 = vor.u32 %v484_v6, %v480_v54  ;;  %v554_v20 = vshll.u32 %v2215_v59, 16  ;;  %v328_v4 = vld [vmem:[%s2145_s7 + $0xb0] sm:$0x1] }
  0x26   : > { %v571_v19 = vshll.u32 %v2225_v7, 16  ;;  %v489_v22 = vrot.slane %v487_v10, 1  ;;  %v2239_v25 = vpack.c.b16 %v441_v13, %v441_v13  ;;  %v440_v26 = vunpack.c.l.b16 %v304_v9 }
  0x27   : > { %v569_v24 = vor.u32 %v568_v11, %v564_v63  ;;  %v556_v31 = vrot.slane %v554_v20, 1  ;;  %v540_v32 = vshrl.u32 %v2228_v8, 16  ;;  %v542_v33 = vshll.u32 %v2228_v8, 16  ;;  %v2292_v20 = vld [vmem:[%s2145_s7 + $0x9c] sm:$0xff] }
  0x28   : > { %669 = vrot.lane.b32.xlu2 %v2219_v61, %s2064_s8  ;;  %v573_v28 = vrot.slane %v571_v19, 1  ;;  %665 = vrot.lane.b32.xlu1 %v2234_v15, %s2064_s8  ;;  %v2254_v35 = vsel %vm466_vm0, %v485_v17, %v489_v22  ;;  %v559_v36 = vshll.u32 %v2239_v25, 16  ;;  %v2257_v37 = vpack.c.b16 %v440_v26, %v440_v26 }
  0x29   : > { %v445_v38 = vunpack.c.l.b16 %v319_v21  ;;  %661 = vrot.lane.b32.xlu0 %v2254_v35, %s2064_s8  ;;  %v557_v42 = vor.u32 %v556_v31, %v552_v14  ;;  %v544_v43 = vrot.slane %v542_v33, 1  ;;  %v600_v44 = vshrl.u32 %v2242_v27, 16  ;;  %v325_v21 = vld [vmem:[%s2145_s7 + $0xa4] sm:$0x1] }
  0x2a   : > { %v561_v46 = vrot.slane %v559_v36, 1  ;;  %v547_v48 = vshll.u32 %v2257_v37, 16  ;;  %v602_v51 = vshll.u32 %v2242_v27, 16  ;;  %v2272_v54 = vsel %vm466_vm0, %v569_v24, %v573_v28 }
  0x2b   : > { %v2264_v50 = vpack.c.b16 %v445_v38, %v445_v38  ;;  %v545_v55 = vor.u32 %v544_v43, %v540_v32  ;;  %v444_v56 = vunpack.c.l.b16 %v316_v40  ;;  %v590_v57 = vshll.u32 %v2249_v34, 16  ;;  %v2309_v43 = vld [vmem:[%s2145_s7 + $0x90] sm:$0xff] }
  0x2c   : > { %v549_v60 = vrot.slane %v547_v48, 1  ;;  %v604_v63 = vrot.slane %v602_v51, 1  ;;  %v588_v3 = vshrl.u32 %v2249_v34, 16  ;;  %v2282_v6 = vsel %vm466_vm0, %v557_v42, %v561_v46 }
  0x2d   : > { %v607_v1 = vshll.u32 %v2264_v50, 16  ;;  %v2284_v9 = vpack.c.b16 %v444_v56, %v444_v56  ;;  %v592_v10 = vrot.slane %v590_v57, 1  ;;  %v443_v11 = vunpack.c.l.b16 %v313_v53 }
  0x2e   : > { %v2287_v13 = vsel %vm466_vm0, %v545_v55, %v549_v60  ;;  %v605_v14 = vor.u32 %v604_v63, %v600_v44  ;;  %v576_v17 = vshrl.u32 %v2268_v52, 16  ;;  %v578_v19 = vshll.u32 %v2268_v52, 16  ;;  %v322_v44 = vld [vmem:[%s2145_s7 + $0x98] sm:$0x1] }
  0x2f   : > { %v609_v22 = vrot.slane %v607_v1, 1  ;;  %v595_v24 = vshll.u32 %v2284_v9, 16  ;;  %v2298_v26 = vpack.c.b16 %v443_v11, %v443_v11  ;;  %v448_v28 = vunpack.c.l.b16 %v328_v4 }
  0x30   : > { %675 = vrot.lane.b32.xlu2 %v2272_v54, %s2064_s8  ;;  %673 = vrot.lane.b32.xlu1 %v2282_v6, %s2064_s8  ;;  %v593_v31 = vor.u32 %v592_v10, %v588_v3  ;;  %v580_v32 = vrot.slane %v578_v19, 1  ;;  %v638_v33 = vshll.u32 %v2276_v58, 16  ;;  %v447_v42 = vunpack.c.l.b16 %v325_v21 }
  0x31   : > { %671 = vrot.lane.b32.xlu0 %v2287_v13, %s2064_s8  ;;  %v597_v36 = vrot.slane %v595_v24, 1  ;;  %v583_v38 = vshll.u32 %v2298_v26, 16  ;;  %v2306_v40 = vpack.c.b16 %v448_v28, %v448_v28  ;;  %v626_v48 = vshll.u32 %v2292_v20, 16 }
  0x32   : > { %v581_v46 = vor.u32 %v580_v32, %v576_v17  ;;  %v2314_v51 = vsel %vm466_vm0, %v605_v14, %v609_v22  ;;  %v636_v55 = vshrl.u32 %v2276_v58, 16  ;;  %v2317_v56 = vpack.c.b16 %v447_v42, %v447_v42  ;;  %v331_v14 = vld [vmem:[%s2145_s7 + $0xbc] sm:$0x1]  ;;  %v2334_v22 = vld [vmem:[%s2145_s7 + $0xb4] sm:$0xff] }
  0x33   : > { %v585_v53 = vrot.slane %v583_v38, 1  ;;  %v640_v57 = vrot.slane %v638_v33, 1  ;;  %v643_v60 = vshll.u32 %v2306_v40, 16  ;;  %v624_v63 = vshrl.u32 %v2292_v20, 16 }
  0x34   : > { %v446_v1 = vunpack.c.l.b16 %v322_v44  ;;  %v2322_v3 = vsel %vm466_vm0, %v593_v31, %v597_v36  ;;  %v628_v4 = vrot.slane %v626_v48, 1  ;;  %v631_v10 = vshll.u32 %v2317_v56, 16 }
  0x35   : > { %v614_v11 = vshll.u32 %v2309_v43, 16  ;;  %v2328_v17 = vsel %vm466_vm0, %v581_v46, %v585_v53  ;;  %v612_v21 = vshrl.u32 %v2309_v43, 16  ;;  %v641_v28 = vor.u32 %v640_v57, %v636_v55 }
  0x36   : > { %v2330_v19 = vpack.c.b16 %v446_v1, %v446_v1  ;;  %v645_v31 = vrot.slane %v643_v60, 1  ;;  %v449_v33 = vunpack.c.l.b16 %v331_v14  ;;  %v629_v36 = vor.u32 %v628_v4, %v624_v63 }
  0x37   : > { %v616_v24 = vrot.slane %v614_v11, 1  ;;  %v633_v38 = vrot.slane %v631_v10, 1  ;;  %v650_v48 = vshll.u32 %v2334_v22, 16  ;;  %v648_v60 = vshrl.u32 %v2334_v22, 16 }
  0x38   : > { %681 = vrot.lane.b32.xlu2 %v2314_v51, %s2064_s8  ;;  %679 = vrot.lane.b32.xlu1 %v2322_v3, %s2064_s8  ;;  %v619_v32 = vshll.u32 %v2330_v19, 16  ;;  %v2343_v46 = vpack.c.b16 %v449_v33, %v449_v33  ;;  %v2347_v53 = vsel %vm466_vm0, %v641_v28, %v645_v31  ;;  %v695_v4 = vrot.slane %v2188_v39, 1 }
  0x39   : > { %677 = vrot.lane.b32.xlu0 %v2328_v17, %s2064_s8  ;;  %v617_v42 = vor.u32 %v616_v24, %v612_v21  ;;  %v2350_v55 = vsel %vm466_vm0, %v629_v36, %v633_v38  ;;  %v652_v1 = vrot.slane %v650_v48, 1  ;;  %v696_v10 = vrot.slane %v2221_v62, 1 }
  0x3a   : > { %v621_v44 = vrot.slane %v619_v32, 1  ;;  %v655_v63 = vshll.u32 %v2343_v46, 16  ;;  %v692_v11 = vrot.slane %v2156_v5, 1  ;;  %v693_v14 = vrot.slane %v2174_v23, 1 }
  0x3b   : > { %v653_v21 = vor.u32 %v652_v1, %v648_v60  ;;  %v697_v28 = vsel %vm691_vm1, %v695_v4, %v696_v10  ;;  %v704_v62 = vrot.slane %v2148_v0, 1  ;;  %v705_v33 = vrot.slane %v2163_v12, 1 }
  0x3c   : > { %v2353_v57 = vsel %vm466_vm0, %v617_v42, %v621_v44  ;;  %v657_v24 = vrot.slane %v655_v63, 1  ;;  %v694_v31 = vsel %vm691_vm1, %v692_v11, %v693_v14  ;;  %v701_v23 = vrot.slane %v2182_v30, 1 }
  0x3d   : > { %v702_v36 = vrot.slane %v2204_v49, 1  ;;  %v698_v38 = vrot.slane %v2152_v2, 1  ;;  %v699_v42 = vrot.slane %v2170_v18, 1  ;;  %v2383_v44 = vsel %vm691_vm1, %v704_v62, %v705_v33 }
  0x3e   : > { %v2370_v32 = vsel %vm466_vm0, %v653_v21, %v657_v24  ;;  %v713_v12 = vrot.slane %v2215_v59, 1  ;;  %v714_v49 = vrot.slane %v2239_v25, 1  ;;  %v710_v18 = vrot.slane %v2228_v8, 1 }
  0x3f   : > { %v2386_v48 = vsel %vm691_vm1, %v701_v23, %v702_v36  ;;  %v700_v60 = vsel %vm691_vm1, %v698_v38, %v699_v42  ;;  %v711_v1 = vrot.slane %v2257_v37, 1  ;;  %v707_v63 = vrot.slane %v2168_v16, 1 }
  0x40   : > { %687 = vrot.lane.b32.xlu2 %v2347_v53, %s2064_s8  ;;  %685 = vrot.lane.b32.xlu1 %v2350_v55, %s2064_s8  ;;  %v708_v4 = vrot.slane %v2179_v29, 1  ;;  %v2401_v10 = vsel %vm691_vm1, %v713_v12, %v714_v49  ;;  %v722_v25 = vrot.slane %v2249_v34, 1  ;;  %v723_v37 = vrot.slane %v2284_v9, 1 }
  0x41   : > { %683 = vrot.lane.b32.xlu0 %v2353_v57, %s2064_s8  ;;  %v2404_v11 = vsel %vm691_vm1, %v710_v18, %v711_v1  ;;  %v719_v29 = vrot.slane %v2268_v52, 1  ;;  %v720_v21 = vrot.slane %v2298_v26, 1  ;;  %v716_v24 = vrot.slane %v2196_v45, 1 }
  0x42   : > { %v2407_v14 = vsel %vm691_vm1, %v707_v63, %v708_v4  ;;  %v2422_v62 = vsel %vm691_vm1, %v722_v25, %v723_v37  ;;  %v731_v9 = vrot.slane %v2292_v20, 1  ;;  %v732_v26 = vrot.slane %v2317_v56, 1 }
  0x43   : > { %v2425_v33 = vsel %vm691_vm1, %v719_v29, %v720_v21  ;;  %v729_v36 = vrot.slane %v2330_v19, 1  ;;  %v725_v38 = vrot.slane %v2242_v27, 1  ;;  %v726_v42 = vrot.slane %v2264_v50, 1 }
  0x44   : > { %v2443_v12 = vsel %vm691_vm1, %v731_v9, %v732_v26 }
  0x45   : > { %v2449_v18 = vsel %vm691_vm1, %v725_v38, %v726_v42 }
  0x48   : > { %742 = vrot.lane.b32.xlu2 %v697_v28, %s2065_s9  ;;  %740 = vrot.lane.b32.xlu1 %v694_v31, %s2065_s9  ;;  %v717_v31 = vrot.slane %v2225_v7, 1  ;;  %v728_v7 = vrot.slane %v2309_v43, 1 }
  0x49   : > { %689 = vrot.lane.b32.xlu0 %v2370_v32, %s2064_s8 }
  0x4a   : > { %v2428_v23 = vsel %vm691_vm1, %v716_v24, %v717_v31  ;;  %v2446_v49 = vsel %vm691_vm1, %v728_v7, %v729_v36 }
  0x50   : > { %748 = vrot.lane.b32.xlu2 %v2383_v44, %s2065_s9  ;;  %746 = vrot.lane.b32.xlu1 %v2386_v48, %s2065_s9 }
  0x51   : > { %744 = vrot.lane.b32.xlu0 %v700_v60, %s2065_s9 }
  0x58   : > { %754 = vrot.lane.b32.xlu2 %v2401_v10, %s2065_s9  ;;  %752 = vrot.lane.b32.xlu1 %v2404_v11, %s2065_s9 }
  0x59   : > { %750 = vrot.lane.b32.xlu0 %v2407_v14, %s2065_s9 }
  0x60   : > { %760 = vrot.lane.b32.xlu2 %v2422_v62, %s2065_s9  ;;  %758 = vrot.lane.b32.xlu1 %v2425_v33, %s2065_s9 }
  0x61   : > { %756 = vrot.lane.b32.xlu0 %v2428_v23, %s2065_s9 }
  0x68   : > { %766 = vrot.lane.b32.xlu2 %v2443_v12, %s2065_s9  ;;  %764 = vrot.lane.b32.xlu1 %v2446_v49, %s2065_s9 }
  0x69   : > { %762 = vrot.lane.b32.xlu0 %v2449_v18, %s2065_s9 }
  0x70   : > { %859 = vrot.lane.b32.xlu2 %v697_v28, %s2066_s10  ;;  %824 = vrot.lane.b32.xlu1 %v2254_v35, %s2067_s11 }
  0x71   : > { %777 = vrot.lane.b32.xlu0 %v2188_v39, %s2068_s12 }
  0x78   : > { %978 = vrot.lane.b32.xlu2 %v700_v60, %s2069_s13  ;;  %943 = vrot.lane.b32.xlu1 %v2202_v47, %s2070_s14 }
  0x79   : > { %896 = vrot.lane.b32.xlu0 %v2152_v2, %s2071_s15 }
  0x7a   : > { %v668_v50 = vpop.permute.xlu2 %667 }
  0x7b   : > { %v1020_v24 = vsel %vm1010_vm3, %v2148_v0, %v668_v50 }
  0x80   : > { %826 = vrot.lane.b32.xlu2 %v2202_v47, %s2067_s11  ;;  %785 = vrot.lane.b32.xlu1 %v2168_v16, %s2068_s12 }
  0x81   : > { %779 = vrot.lane.b32.xlu0 %v2152_v2, %s2068_s12 }
  0x82   : > { %v2473_v35 = vpop.permute.xlu2 %669 }
  0x88   : > { %867 = vrot.lane.b32.xlu2 %v2407_v14, %s2066_s10  ;;  %861 = vrot.lane.b32.xlu1 %v700_v60, %s2066_s10 }
  0x89   : > { %832 = vrot.lane.b32.xlu0 %v2219_v61, %s2067_s11 }
  0x8a   : > { %v2480_v56 = vpop.permute.xlu2 %675 }
  0x90   : > { %945 = vrot.lane.b32.xlu2 %v2234_v15, %s2070_s14  ;;  %904 = vrot.lane.b32.xlu1 %v2228_v8, %s2071_s15 }
  0x91   : > { %898 = vrot.lane.b32.xlu0 %v2182_v30, %s2071_s15 }
  0x92   : > { %v2488_v47 = vpop.permute.xlu2 %681  ;;  %v2490_v19 = vpop.permute.xlu1 %663 }
  0x93   : > { %v2492_v28 = vpop.permute.xlu0 %659 }
  0x98   : > { %986 = vrot.lane.b32.xlu2 %v2404_v11, %s2069_s13  ;;  %980 = vrot.lane.b32.xlu1 %v2386_v48, %s2069_s13 }
  0x99   : > { %951 = vrot.lane.b32.xlu0 %v2287_v13, %s2070_s14 }
  0x9a   : > { %v2500_v60 = vpop.permute.xlu2 %687  ;;  %v666_v1 = vpop.permute.xlu1 %665 }
  0x9b   : > { %v662_v63 = vpop.permute.xlu0 %661 }
  0x9c   : > { %v1014_v4 = vsel %vm1010_vm3, %v2188_v39, %v662_v63 }
  0xa0   : > { %875 = vrot.lane.b32.xlu2 %v2425_v33, %s2066_s10  ;;  %840 = vrot.lane.b32.xlu1 %v2328_v17, %s2067_s11 }
  0xa1   : > { %793 = vrot.lane.b32.xlu0 %v2268_v52, %s2068_s12 }
  0xa2   : > { %v743_v25 = vpop.permute.xlu2 %742  ;;  %v674_v37 = vpop.permute.xlu1 %673 }
  0xa3   : > { %v2511_v29 = vsel %vm1043_vm2, %v1014_v4, %v743_v25  ;;  %v2513_v21 = vpop.permute.xlu0 %671  ;;  %v1026_v7 = vsel %vm1010_vm3, %v2215_v59, %v674_v37 }
  0xa8   : > { %994 = vrot.lane.b32.xlu2 %v2422_v62, %s2069_s13  ;;  %959 = vrot.lane.b32.xlu1 %v2322_v3, %s2070_s14 }
  0xa9   : > { %912 = vrot.lane.b32.xlu0 %v2249_v34, %s2071_s15 }
  0xaa   : > { %v749_v39 = vpop.permute.xlu2 %748  ;;  %v680_v31 = vpop.permute.xlu1 %679 }
  0xab   : > { %v2524_v9 = vsel %vm1043_vm2, %v1020_v24, %v749_v39  ;;  %v2526_v26 = vpop.permute.xlu0 %677  ;;  %v1032_v4 = vsel %vm1010_vm3, %v2249_v34, %v680_v31 }
  0xb0   : > { %828 = vrot.lane.b32.xlu2 %v2234_v15, %s2067_s11  ;;  %787 = vrot.lane.b32.xlu1 %v2228_v8, %s2068_s12  ;;  %v1282_v15 = vld [vmem:[%s3179_s1 + $0x20] sm:$0xf] }
  0xb1   : > { %781 = vrot.lane.b32.xlu0 %v2182_v30, %s2068_s12  ;;  %v1300_v63 = vunpack.c.l.b16 %v1282_v15 }
  0xb2   : > { %v755_v36 = vpop.permute.xlu2 %754  ;;  %v686_v38 = vpop.permute.xlu1 %685 }
  0xb3   : > { %v2537_v42 = vsel %vm1043_vm2, %v1026_v7, %v755_v36  ;;  %v2539_v50 = vpop.permute.xlu0 %683  ;;  %v1305_v37 = vpack.c.b16 %v1300_v63, %v1300_v63  ;;  %v1018_v36 = vsel %vm1010_vm3, %v2182_v30, %v666_v1  ;;  %v1952_v1 = vld [vmem:[%s3179_s1 + $0x8] sm:$0xff] }
  0xb8   : > { %869 = vrot.lane.b32.xlu2 %v2404_v11, %s2066_s10  ;;  %863 = vrot.lane.b32.xlu1 %v2386_v48, %s2066_s10  ;;  %v1345_v11 = vsel %vm1343_vm4, %v1305_v37, 0  ;;  %v1954_v48 = vld [vmem:[%s3179_s1 + $0x18] sm:$0xff] }
  0xb9   : > { %834 = vrot.lane.b32.xlu0 %v2287_v13, %s2067_s11  ;;  %1350 = vmatpush.bf16.msra.mxu0 %v1345_v11  ;;  %v1038_v13 = vsel %vm1010_vm3, %v2292_v20, %v686_v38  ;;  %v1016_v38 = vsel %vm1010_vm3, %v2152_v2, %v2490_v19  ;;  %v1024_v19 = vsel %vm1010_vm3, %v2228_v8, %v2513_v21 }
  0xba   : > { %v761_v25 = vpop.permute.xlu2 %760  ;;  %v2555_v39 = vpop.permute.xlu1 %740  ;;  %1955 = vmatpush.bf16.msra.mxu1 %v1345_v11  ;;  %1956 = vmatpush.bf16.msra.mxu2 %v1345_v11 }
  0xbb   : > { %v2553_v24 = vsel %vm1043_vm2, %v1032_v4, %v761_v25  ;;  %v2557_v7 = vpop.permute.xlu0 %689  ;;  %1957 = vmatpush.bf16.msra.mxu3 %v1345_v11  ;;  %v1953_v4 = vld [vmem:[%s3179_s1 + $0x10] sm:$0xff] }
  0xbd   : > { %1351 = vmatpush.bf16.msra.mxu0 %v1954_v48 }
  0xbe   : > { %1958 = vmatpush.bf16.msra.mxu1 %v1954_v48  ;;  %1959 = vmatpush.bf16.msra.mxu2 %v1954_v48 }
  0xbf   : > { %1960 = vmatpush.bf16.msra.mxu3 %v1954_v48  ;;  %v1951_v48 = vld [vmem:[%s3179_s1] sm:$0xff] }
  0xc0   : > { %947 = vrot.lane.b32.xlu2 %v2192_v41, %s2070_s14  ;;  %906 = vrot.lane.b32.xlu1 %v2215_v59, %s2071_s15 }
  0xc1   : > { %900 = vrot.lane.b32.xlu0 %v2148_v0, %s2071_s15  ;;  %1352 = vmatpush.bf16.msra.mxu0 %v1953_v4 }
  0xc2   : > { %v767_v31 = vpop.permute.xlu2 %766  ;;  %v747_v63 = vpop.permute.xlu1 %746  ;;  %1961 = vmatpush.bf16.msra.mxu1 %v1953_v4  ;;  %1962 = vmatpush.bf16.msra.mxu2 %v1953_v4 }
  0xc3   : > { %v2573_v15 = vsel %vm1043_vm2, %v1038_v13, %v767_v31  ;;  %v2582_v25 = vsel %vm1043_vm2, %v1018_v36, %v747_v63  ;;  %v745_v37 = vpop.permute.xlu0 %744  ;;  %1963 = vmatpush.bf16.msra.mxu3 %v1953_v4  ;;  %v1022_v13 = vsel %vm1010_vm3, %v2168_v16, %v2473_v35  ;;  %v1030_v35 = vsel %vm1010_vm3, %v2268_v52, %v2526_v26 }
  0xc4   : > { %v2585_v30 = vsel %vm1043_vm2, %v1016_v38, %v745_v37  ;;  %v1028_v4 = vsel %vm1010_vm3, %v2196_v45, %v2480_v56  ;;  %v1036_v56 = vsel %vm1010_vm3, %v2309_v43, %v2539_v50  ;;  %v735_v50 = vrot.slane %v2306_v40, 1 }
  0xc5   : > { %1353 = vmatpush.bf16.msra.mxu0 %v1952_v1 }
  0xc6   : > { %1964 = vmatpush.bf16.msra.mxu1 %v1952_v1  ;;  %1965 = vmatpush.bf16.msra.mxu2 %v1952_v1 }
  0xc7   : > { %1966 = vmatpush.bf16.msra.mxu3 %v1952_v1  ;;  %v1034_v1 = vsel %vm1010_vm3, %v2242_v27, %v2488_v47 }
  0xc8   : > { %988 = vrot.lane.b32.xlu2 %v2401_v10, %s2069_s13  ;;  %982 = vrot.lane.b32.xlu1 %v2383_v44, %s2069_s13 }
  0xc9   : > { %953 = vrot.lane.b32.xlu0 %v2282_v6, %s2070_s14  ;;  %1354 = vmatpush.bf16.msra.mxu0 %v1951_v48 }
  0xca   : > { %v860_v2 = vpop.permute.xlu2 %859  ;;  %v753_v11 = vpop.permute.xlu1 %752  ;;  %1967 = vmatpush.bf16.msra.mxu1 %v1951_v48  ;;  %1968 = vmatpush.bf16.msra.mxu2 %v1951_v48 }
  0xcb   : > { %v2606_v31 = vsel %vm1043_vm2, %v1024_v19, %v753_v11  ;;  %v751_v36 = vpop.permute.xlu0 %750  ;;  %1969 = vmatpush.bf16.msra.mxu3 %v1951_v48 }
  0xcc   : > { %v2609_v63 = vsel %vm1043_vm2, %v1022_v13, %v751_v36  ;;  %v1012_v36 = vsel %vm1010_vm3, %v2156_v5, %v2492_v28 }
  0xd0   : > { %842 = vrot.lane.b32.xlu2 %v2322_v3, %s2067_s11  ;;  %801 = vrot.lane.b32.xlu1 %v2292_v20, %s2068_s12 }
  0xd1   : > { %795 = vrot.lane.b32.xlu0 %v2249_v34, %s2068_s12 }
  0xd2   : > { %v979_v8 = vpop.permute.xlu2 %978  ;;  %v759_v21 = vpop.permute.xlu1 %758 }
  0xd3   : > { %v2624_v38 = vsel %vm1043_vm2, %v1030_v35, %v759_v21  ;;  %v757_v3 = vpop.permute.xlu0 %756  ;;  %v1045_v21 = vsel %vm1043_vm2, %v1012_v36, %v2555_v39 }
  0xd4   : > { %v2627_v37 = vsel %vm1043_vm2, %v1028_v4, %v757_v3 }
  0xd8   : > { %883 = vrot.lane.b32.xlu2 %v2443_v12, %s2066_s10  ;;  %877 = vrot.lane.b32.xlu1 %v2422_v62, %s2066_s10  ;;  %v734_v62 = vrot.slane %v2276_v58, 1 }
  0xd9   : > { %848 = vrot.lane.b32.xlu0 %v2350_v55, %s2067_s11 }
  0xda   : > { %v827_v34 = vpop.permute.xlu2 %826  ;;  %v765_v26 = vpop.permute.xlu1 %764  ;;  %v2661_v4 = vsel %vm691_vm1, %v734_v62, %v735_v50 }
  0xdb   : > { %v2642_v19 = vsel %vm1043_vm2, %v1036_v56, %v765_v26  ;;  %v763_v11 = vpop.permute.xlu0 %762 }
  0xdc   : > { %v2645_v48 = vsel %vm1043_vm2, %v1034_v1, %v763_v11 }
  0xe0   : > { %961 = vrot.lane.b32.xlu2 %v2314_v51, %s2070_s14  ;;  %920 = vrot.lane.b32.xlu1 %v2276_v58, %s2071_s15 }
  0xe1   : > { %914 = vrot.lane.b32.xlu0 %v2242_v27, %s2071_s15 }
  0xe2   : > { %v868_v47 = vpop.permute.xlu2 %867  ;;  %v825_v13 = vpop.permute.xlu1 %824 }
  0xe3   : > { %v778_v35 = vpop.permute.xlu0 %777 }
  0xe4   : > { %v1078_v3 = vsel %vm1076_vm5, %v1045_v21, %v778_v35 }
  0xe5   : > { %v1111_v40 = vsel %vm1109_vm6, %v1078_v3, %v825_v13 }
  0xe6   : > { %v1144_v39 = vsel %vm1142_vm7, %v1111_v40, %v860_v2 }
  0xe8   : > { %1002 = vrot.lane.b32.xlu2 %v2661_v4, %s2069_s13  ;;  %996 = vrot.lane.b32.xlu1 %v2449_v18, %s2069_s13 }
  0xe9   : > { %967 = vrot.lane.b32.xlu0 %v2347_v53, %s2070_s14 }
  0xea   : > { %v946_v5 = vpop.permute.xlu2 %945  ;;  %v944_v28 = vpop.permute.xlu1 %943 }
  0xeb   : > { %v897_v56 = vpop.permute.xlu0 %896 }
  0xec   : > { %v1177_v26 = vsel %vm1175_vm8, %v1144_v39, %v897_v56 }
  0xed   : > { %v1210_v1 = vsel %vm1208_vm9, %v1177_v26, %v944_v28 }
  0xee   : > { %v1243_v11 = vsel %vm1241_vm10, %v1210_v1, %v979_v8 }
  0xef   : > { %1915 = vmatmul.msk.bf16.vlgmr.msra.gmra.mxu0 %vm1310_vm11, %v1243_v11 }
  0xf0   : > { %830 = vrot.lane.b32.xlu2 %v2192_v41, %s2067_s11  ;;  %789 = vrot.lane.b32.xlu1 %v2215_v59, %s2068_s12 }
  0xf1   : > { %783 = vrot.lane.b32.xlu0 %v2148_v0, %s2068_s12 }
  0xf2   : > { %v987_v2 = vpop.permute.xlu2 %986  ;;  %v786_v62 = vpop.permute.xlu1 %785 }
  0xf3   : > { %v780_v50 = vpop.permute.xlu0 %779  ;;  %v1086_v36 = vsel %vm1076_vm5, %v2524_v9, %v786_v62 }
  0xf4   : > { %v1080_v59 = vsel %vm1076_vm5, %v2511_v29, %v780_v50 }
  0xf8   : > { %871 = vrot.lane.b32.xlu2 %v2401_v10, %s2066_s10  ;;  %865 = vrot.lane.b32.xlu1 %v2383_v44, %s2066_s10 }
  0xf9   : > { %836 = vrot.lane.b32.xlu0 %v2282_v6, %s2067_s11  ;;  %v1113_v6 = vsel %vm1109_vm6, %v1080_v59, %v827_v34 }
  0xfa   : > { %v876_v8 = vpop.permute.xlu2 %875  ;;  %v862_v41 = vpop.permute.xlu1 %861 }
  0xfb   : > { %v833_v13 = vpop.permute.xlu0 %832  ;;  %v1146_v35 = vsel %vm1142_vm7, %v1113_v6, %v862_v41 }
 0x100   : > { %949 = vrot.lane.b32.xlu2 %v2219_v61, %s2070_s14  ;;  %908 = vrot.lane.b32.xlu1 %v2196_v45, %s2071_s15  ;;  %v1119_v61 = vsel %vm1109_vm6, %v1086_v36, %v833_v13 }
 0x101   : > { %902 = vrot.lane.b32.xlu0 %v2168_v16, %s2071_s15  ;;  %v1152_v29 = vsel %vm1142_vm7, %v1119_v61, %v868_v47 }
 0x102   : > { %v995_v0 = vpop.permute.xlu2 %994  ;;  %v905_v44 = vpop.permute.xlu1 %904 }
 0x103   : > { %v899_v10 = vpop.permute.xlu0 %898  ;;  %v1185_v3 = vsel %vm1175_vm8, %v1152_v29, %v905_v44 }
 0x104   : > { %v1179_v21 = vsel %vm1175_vm8, %v1146_v35, %v899_v10 }
 0x105   : > { %v1212_v9 = vsel %vm1208_vm9, %v1179_v21, %v946_v5 }
 0x108   : > { %990 = vrot.lane.b32.xlu2 %v2428_v23, %s2069_s13  ;;  %984 = vrot.lane.b32.xlu1 %v2407_v14, %s2069_s13 }
 0x109   : > { %955 = vrot.lane.b32.xlu0 %v2272_v54, %s2070_s14 }
 0x10a   : > { %v829_v16 = vpop.permute.xlu2 %828  ;;  %v981_v34 = vpop.permute.xlu1 %980 }
 0x10b   : > { %v952_v40 = vpop.permute.xlu0 %951  ;;  %v1245_v28 = vsel %vm1241_vm10, %v1212_v9, %v981_v34 }
 0x10c   : > { %v1218_v39 = vsel %vm1208_vm9, %v1185_v3, %v952_v40  ;;  %1916 = vmatmul.msk.bf16.gmra.mxu0 %vm1310_vm11, %v1245_v28  ;;  %v334_v40 = vld [vmem:[%s2145_s7 + $0xc8] sm:$0x1] }
 0x10d   : > { %v1251_v14 = vsel %vm1241_vm10, %v1218_v39, %v987_v2  ;;  %v1949_v39 = vld [vmem:[%s2145_s7 + $0xc0] sm:$0xff] }
 0x10e   : > { %1919 = vmatmul.msk.bf16.vlgmr.msra.gmra.mxu1 %vm1310_vm11, %v1251_v14  ;;  %v810_v14 = vunpack.c.l.b16 %v334_v40 }
 0x110   : > { %844 = vrot.lane.b32.xlu2 %v2314_v51, %s2067_s11  ;;  %803 = vrot.lane.b32.xlu1 %v2276_v58, %s2068_s12 }
 0x111   : > { %797 = vrot.lane.b32.xlu0 %v2242_v27, %s2068_s12 }
 0x112   : > { %v870_v47 = vpop.permute.xlu2 %869  ;;  %v841_v5 = vpop.permute.xlu1 %840 }
 0x113   : > { %v794_v56 = vpop.permute.xlu0 %793 }
 0x114   : > { %v1094_v26 = vsel %vm1076_vm5, %v2627_v37, %v794_v56  ;;  %v813_v56 = vshrl.u32 %v1949_v39, 16 }
 0x115   : > { %v1127_v1 = vsel %vm1109_vm6, %v1094_v26, %v841_v5 }
 0x116   : > { %v1160_v27 = vsel %vm1142_vm7, %v1127_v1, %v876_v8 }
 0x118   : > { %885 = vrot.lane.b32.xlu2 %v2661_v4, %s2066_s10  ;;  %879 = vrot.lane.b32.xlu1 %v2449_v18, %s2066_s10  ;;  %v738_v18 = vrot.slane %v2343_v46, 1 }
 0x119   : > { %850 = vrot.lane.b32.xlu0 %v2347_v53, %s2067_s11  ;;  %v737_v53 = vrot.slane %v2334_v22, 1 }
 0x11a   : > { %v948_v58 = vpop.permute.xlu2 %947  ;;  %v960_v51 = vpop.permute.xlu1 %959 }
 0x11b   : > { %v913_v11 = vpop.permute.xlu0 %912  ;;  %v2745_v13 = vsel %vm691_vm1, %v737_v53, %v738_v18 }
 0x11c   : > { %v1193_v2 = vsel %vm1175_vm8, %v1160_v27, %v913_v11 }
 0x11d   : > { %v1226_v37 = vsel %vm1208_vm9, %v1193_v2, %v960_v51 }
 0x11e   : > { %v1259_v62 = vsel %vm1241_vm10, %v1226_v37, %v995_v0 }
 0x11f   : > { %1923 = vmatmul.msk.bf16.vlgmr.msra.gmra.mxu2 %vm1310_vm11, %v1259_v62 }
 0x120   : > { %963 = vrot.lane.b32.xlu2 %v2353_v57, %s2070_s14  ;;  %922 = vrot.lane.b32.xlu1 %v2334_v22, %s2071_s15 }
 0x121   : > { %916 = vrot.lane.b32.xlu0 %v2309_v43, %s2071_s15 }
 0x122   : > { %v989_v50 = vpop.permute.xlu2 %988  ;;  %v788_v8 = vpop.permute.xlu1 %787 }
 0x123   : > { %v782_v41 = vpop.permute.xlu0 %781  ;;  %v1088_v61 = vsel %vm1076_vm5, %v2609_v63, %v788_v8 }
 0x124   : > { %v1082_v10 = vsel %vm1076_vm5, %v2585_v30, %v782_v41 }
 0x125   : > { %v1115_v35 = vsel %vm1109_vm6, %v1082_v10, %v829_v16 }
 0x128   : > { %1004 = vrot.lane.b32.xlu2 %v2745_v13, %s2069_s13  ;;  %998 = vrot.lane.b32.xlu1 %v2446_v49, %s2069_s13 }
 0x129   : > { %969 = vrot.lane.b32.xlu0 %v2370_v32, %s2070_s14 }
 0x12a   : > { %v843_v0 = vpop.permute.xlu2 %842  ;;  %v864_v46 = vpop.permute.xlu1 %863 }
 0x12b   : > { %v835_v59 = vpop.permute.xlu0 %834  ;;  %v1148_v21 = vsel %vm1142_vm7, %v1115_v35, %v864_v46 }
 0x130   : > { %873 = vrot.lane.b32.xlu2 %v2428_v23, %s2066_s10  ;;  %838 = vrot.lane.b32.xlu1 %v2272_v54, %s2067_s11  ;;  %v1121_v23 = vsel %vm1109_vm6, %v1088_v61, %v835_v59 }
 0x131   : > { %791 = vrot.lane.b32.xlu0 %v2196_v45, %s2068_s12  ;;  %v1154_v30 = vsel %vm1142_vm7, %v1121_v23, %v870_v47 }
 0x132   : > { %v884_v44 = vpop.permute.xlu2 %883  ;;  %v907_v6 = vpop.permute.xlu1 %906 }
 0x133   : > { %v901_v36 = vpop.permute.xlu0 %900  ;;  %v1187_v29 = vsel %vm1175_vm8, %v1154_v30, %v907_v6  ;;  %v1950_v6 = vld [vmem:[%s2145_s7 + $0xcc] sm:$0xff] }
 0x134   : > { %v1181_v54 = vsel %vm1175_vm8, %v1148_v21, %v901_v36  ;;  %v934_v21 = vshll.u32 %v1950_v6, 16 }
 0x135   : > { %v1214_v63 = vsel %vm1208_vm9, %v1181_v54, %v948_v58 }
 0x136   : > { %v936_v30 = vrot.slane %v934_v21, 1 }
 0x138   : > { %992 = vrot.lane.b32.xlu2 %v2425_v33, %s2069_s13  ;;  %957 = vrot.lane.b32.xlu1 %v2328_v17, %s2070_s14 }
 0x139   : > { %910 = vrot.lane.b32.xlu0 %v2268_v52, %s2071_s15 }
 0x13a   : > { %v962_v45 = vpop.permute.xlu2 %961  ;;  %v983_v16 = vpop.permute.xlu1 %982 }
 0x13b   : > { %v954_v9 = vpop.permute.xlu0 %953  ;;  %v1247_v34 = vsel %vm1241_vm10, %v1214_v63, %v983_v16  ;;  %v975_v16 = vrot.slane %v1950_v6, 1 }
 0x13c   : > { %v1220_v33 = vsel %vm1208_vm9, %v1187_v29, %v954_v9  ;;  %1917 = vmatmul.msk.bf16.gmra.mxu0 %vm1310_vm11, %v1247_v34 }
 0x13d   : > { %v1253_v17 = vsel %vm1241_vm10, %v1220_v33, %v989_v50  ;;  %v856_v50 = vrot.slane %v1949_v39, 1 }
 0x13e   : > { %1920 = vmatmul.msk.bf16.gmra.mxu1 %vm1310_vm11, %v1253_v17 }
 0x140   : > { %805 = vrot.lane.b32.xlu2 %v2334_v22, %s2068_s12  ;;  %799 = vrot.lane.b32.xlu1 %v2309_v43, %s2068_s12  ;;  %v811_v22 = vpack.c.b16 %v810_v14, %v810_v14  ;;  %v815_v43 = vshll.u32 %v1949_v39, 16 }
 0x141   : > { %768 = vrot.lane.b32.xlu0 %v2661_v4, %s2065_s9 }
 0x142   : > { %v1003_v52 = vpop.permute.xlu2 %1002  ;;  %v802_v3 = vpop.permute.xlu1 %801  ;;  %v817_v26 = vrot.slane %v815_v43, 1  ;;  %v820_v1 = vshll.u32 %v811_v22, 16  ;;  %v857_v8 = vrot.slane %v811_v22, 1 }
 0x143   : > { %v796_v28 = vpop.permute.xlu0 %795 }
 0x144   : > { %v1096_v58 = vsel %vm1076_vm5, %v2624_v38, %v796_v28 }
 0x145   : > { %v1129_v11 = vsel %vm1109_vm6, %v1096_v58, %v843_v0 }
 0x148   : > { %881 = vrot.lane.b32.xlu2 %v2446_v49, %s2066_s10  ;;  %852 = vrot.lane.b32.xlu1 %v2370_v32, %s2067_s11  ;;  %v818_v32 = vor.u32 %v817_v26, %v813_v56  ;;  %v822_v49 = vrot.slane %v820_v1, 1 }
 0x149   : > { %846 = vrot.lane.b32.xlu0 %v2353_v57, %s2067_s11 }
 0x14a   : > { %v2795_v47 = vpop.permute.xlu2 %830  ;;  %v878_v4 = vpop.permute.xlu1 %877  ;;  %v823_v2 = vsel %vm466_vm0, %v818_v32, %v822_v49 }
 0x14b   : > { %v849_v5 = vpop.permute.xlu0 %848  ;;  %v1162_v37 = vsel %vm1142_vm7, %v1129_v11, %v878_v4 }
 0x150   : > { %924 = vrot.lane.b32.xlu2 %v1949_v39, %s2071_s15  ;;  %918 = vrot.lane.b32.xlu1 %v2292_v20, %s2071_s15  ;;  %v1102_v20 = vsel %vm1076_vm5, %v2642_v19, %v802_v3 }
 0x151   : > { %887 = vrot.lane.b32.xlu0 %v2745_v13, %s2066_s10  ;;  %v1135_v62 = vsel %vm1109_vm6, %v1102_v20, %v849_v5 }
 0x152   : > { %v2802_v57 = vpop.permute.xlu2 %871  ;;  %v921_v51 = vpop.permute.xlu1 %920  ;;  %v1168_v38 = vsel %vm1142_vm7, %v1135_v62, %v884_v44  ;;  %v858_v44 = vsel %vm691_vm1, %v856_v50, %v857_v8 }
 0x153   : > { %v915_v27 = vpop.permute.xlu0 %914  ;;  %v1201_v41 = vsel %vm1175_vm8, %v1168_v38, %v921_v51 }
 0x154   : > { %v1195_v53 = vsel %vm1175_vm8, %v1162_v37, %v915_v27 }
 0x155   : > { %v1228_v19 = vsel %vm1208_vm9, %v1195_v53, %v962_v45  ;;  %v932_v45 = vshrl.u32 %v1950_v6, 16 }
 0x157   : > { %v937_v34 = vor.u32 %v936_v30, %v932_v45 }
 0x158   : > { %1000 = vrot.lane.b32.xlu2 %v2443_v12, %s2069_s13  ;;  %971 = vrot.lane.b32.xlu1 %v823_v2, %s2070_s14  ;;  %v337_v12 = vld [vmem:[%s2145_s7 + $0xd4] sm:$0x1] }
 0x159   : > { %965 = vrot.lane.b32.xlu0 %v2350_v55, %s2070_s14  ;;  %v929_v36 = vunpack.c.l.b16 %v337_v12 }
 0x15a   : > { %v997_v18 = vpop.permute.xlu1 %996  ;;  %v2823_v59 = vpop.permute.xlu2 %949 }
 0x15b   : > { %v968_v0 = vpop.permute.xlu0 %967  ;;  %v1261_v46 = vsel %vm1241_vm10, %v1228_v19, %v997_v18  ;;  %v930_v61 = vpack.c.b16 %v929_v36, %v929_v36 }
 0x15c   : > { %v1234_v10 = vsel %vm1208_vm9, %v1201_v41, %v968_v0  ;;  %1924 = vmatmul.msk.bf16.gmra.mxu2 %vm1310_vm11, %v1261_v46 }
 0x15d   : > { %v1267_v55 = vsel %vm1241_vm10, %v1234_v10, %v1003_v52  ;;  %v939_v63 = vshll.u32 %v930_v61, 16  ;;  %v976_v29 = vrot.slane %v930_v61, 1  ;;  %v2848_v52 = vld [vmem:[%s3181_s3] ss:$0 sm:$0xff] }
 0x15e   : > { %1927 = vmatmul.msk.bf16.vlgmr.msra.gmra.mxu3 %vm1310_vm11, %v1267_v55 }
 0x15f   : > { %v941_v33 = vrot.slane %v939_v63, 1  ;;  %v977_v28 = vsel %vm691_vm1, %v975_v16, %v976_v29 }
 0x160   : > { %807 = vrot.lane.b32.xlu2 %v1949_v39, %s2068_s12  ;;  %770 = vrot.lane.b32.xlu1 %v2745_v13, %s2065_s9  ;;  %s1824_s9 = sshll.u32 %s3195_s19, 6  ;;  %v2843_v13 = vld [vmem:[%s3180_s2] ss:$0 sm:$0xff] }
 0x161   : > { %1006 = vrot.lane.b32.xlu0 %v858_v44, %s2069_s13  ;;  %v942_v39 = vsel %vm466_vm0, %v937_v34, %v941_v33 }
 0x162   : > { %v790_v35 = vpop.permute.xlu1 %789  ;;  %v991_v54 = vpop.permute.xlu2 %990 }
 0x163   : > { %v784_v23 = vpop.permute.xlu0 %783 }
 0x164   : > { %v1084_v4 = vsel %vm1076_vm5, %v2582_v25, %v784_v23  ;;  %v1090_v25 = vsel %vm1076_vm5, %v2606_v31, %v790_v35 }
 0x165   : > { %v1117_v32 = vsel %vm1109_vm6, %v1084_v4, %v2795_v47 }
 0x168   : > { %926 = vrot.lane.b32.xlu2 %v1950_v6, %s2071_s15  ;;  %889 = vrot.lane.b32.xlu1 %v858_v44, %s2066_s10  ;;  %s272_s10 = sadd.s32 %s1824_s9, %s1823_s18 }
 0x169   : > { %854 = vrot.lane.b32.xlu0 %v823_v2, %s2067_s11  ;;  %s1825_s11 = sshll.u32 %s272_s10, 2 }
 0x16a   : > { %v866_v9 = vpop.permute.xlu1 %865  ;;  %v2854_v22 = vpop.permute.xlu2 %844  ;;  %s2863_s30 = scalar_lea.vmem %s3182_s4, %s1825_s11 }
 0x16b   : > { %v837_v17 = vpop.permute.xlu0 %836  ;;  %v1150_v58 = vsel %vm1142_vm7, %v1117_v32, %v866_v9 }
 0x16c   : > { %v1356_v3 = vpop.f32.mrf.mxu0  ;;  %v1123_v51 = vsel %vm1109_vm6, %v1090_v25, %v837_v17 }
 0x16d   : > { %v1440_v40 = vmul.f32 %v2843_v13, %v1356_v3  ;;  %v1156_v47 = vsel %vm1142_vm7, %v1123_v51, %v2802_v57 }
 0x16f   : > { %v1476_v14 = vadd.f32 %v2848_v52, %v1440_v40 }
 0x170   : > { %1008 = vrot.lane.b32.xlu1 %v977_v28, %s2069_s13 }
 0x171   : > { %v1508_v43 = vmax.f32 %v1476_v14, 0.0  ;;  %973 = vrot.lane.b32.xlu0 %v942_v39, %s2070_s14 }
 0x172   : > { %v909_v5 = vpop.permute.xlu1 %908  ;;  %v886_v20 = vpop.permute.xlu2 %885 }
 0x173   : > { %v1611_v56 = vpack.c.bf16 %v1508_v43, %v1508_v43  ;;  %v903_v26 = vpop.permute.xlu0 %902  ;;  %v1540_v37 = vsel %vm1010_vm3, %v1508_v43, 0.0  ;;  %v1189_v53 = vsel %vm1175_vm8, %v1156_v47, %v909_v5 }
 0x174   : > { %v1358_v1 = vpop.f32.mrf.mxu0  ;;  %v1183_v27 = vsel %vm1175_vm8, %v1150_v58, %v903_v26 }
 0x175   : > { %1644 = vst.msk [vmem:[%s2863_s30] sm:$0xf] %vm1643_vm12, %v1611_v56  ;;  %v1441_v49 = vmul.f32 %v2843_v13, %v1358_v1  ;;  %v1216_v62 = vsel %vm1208_vm9, %v1183_v27, %v2823_v59 }
 0x177   : > { %v1477_v11 = vadd.f32 %v2848_v52, %v1441_v49 }
 0x179   : > { %v1509_v2 = vmax.f32 %v1477_v11, 0.0 }
 0x17a   : > { %v985_v31 = vpop.permute.xlu1 %984  ;;  %v964_v12 = vpop.permute.xlu2 %963 }
 0x17b   : > { %v1541_v38 = vsel %vm1010_vm3, %v1509_v2, 0.0  ;;  %v1612_v19 = vpack.c.bf16 %v1509_v2, %v1509_v2  ;;  %v956_v18 = vpop.permute.xlu0 %955  ;;  %v1249_v50 = vsel %vm1241_vm10, %v1216_v62, %v985_v31 }
 0x17c   : > { %v1542_v8 = vadd.f32 %v1541_v38, %v1540_v37  ;;  %v1222_v41 = vsel %vm1208_vm9, %v1189_v53, %v956_v18  ;;  %1918 = vmatmul.msk.bf16.gmra.mxu0 %vm1310_vm11, %v1249_v50 }
 0x17d   : > { %1645 = vst.msk [vmem:[%s2863_s30 + $0x4] sm:$0xf] %vm1643_vm12, %v1612_v19  ;;  %v1255_v57 = vsel %vm1241_vm10, %v1222_v41, %v991_v54 }
 0x17e   : > { %1921 = vmatmul.msk.bf16.gmra.mxu1 %vm1310_vm11, %v1255_v57 }
 0x182   : > { %v804_v0 = vpop.permute.xlu1 %803  ;;  %v1005_v61 = vpop.permute.xlu2 %1004 }
 0x183   : > { %v798_v46 = vpop.permute.xlu0 %797  ;;  %v1104_v39 = vsel %vm1076_vm5, %v2573_v15, %v804_v0 }
 0x184   : > { %v1098_v29 = vsel %vm1076_vm5, %v2553_v24, %v798_v46 }
 0x185   : > { %v1131_v24 = vsel %vm1109_vm6, %v1098_v29, %v2854_v22 }
 0x189   : > { %v1361_v59 = vpop.f32.mrf.mxu0 }
 0x18a   : > { %v1442_v10 = vmul.f32 %v2843_v13, %v1361_v59  ;;  %v880_v55 = vpop.permute.xlu1 %879  ;;  %v874_v26 = vpop.permute.xlu2 %873 }
 0x18b   : > { %v1376_v44 = vpop.f32.mrf.mxu1  ;;  %v851_v6 = vpop.permute.xlu0 %850  ;;  %v1164_v14 = vsel %vm1142_vm7, %v1131_v24, %v880_v55 }
 0x18c   : > { %v1478_v36 = vadd.f32 %v2848_v52, %v1442_v10  ;;  %v1448_v35 = vmul.f32 %v2843_v13, %v1376_v44  ;;  %v1137_v5 = vsel %vm1109_vm6, %v1104_v39, %v851_v6 }
 0x18d   : > { %v1170_v25 = vsel %vm1142_vm7, %v1137_v5, %v886_v20 }
 0x18e   : > { %v1510_v21 = vmax.f32 %v1478_v36, 0.0  ;;  %v1484_v23 = vadd.f32 %v2848_v52, %v1448_v35 }
 0x190   : > { %v1543_v54 = vsel %vm1010_vm3, %v1510_v21, 0.0  ;;  %v1613_v45 = vpack.c.bf16 %v1510_v21, %v1510_v21  ;;  %v2895_v30 = vmax.f32 %v1484_v23, 0.0 }
 0x191   : > { %v1544_v63 = vadd.f32 %v1543_v54, %v1542_v8  ;;  %v1363_v16 = vpop.f32.mrf.mxu0 }
 0x192   : > { %1646 = vst.msk [vmem:[%s2863_s30 + $0x8] sm:$0xf] %vm1643_vm12, %v1613_v45  ;;  %v1619_v9 = vpack.c.bf16 %v2895_v30, %v2895_v30  ;;  %v1443_v34 = vmul.f32 %v2843_v13, %v1363_v16  ;;  %v923_v33 = vpop.permute.xlu1 %922  ;;  %v993_v37 = vpop.permute.xlu2 %992 }
 0x193   : > { %v1378_v17 = vpop.f32.mrf.mxu1  ;;  %v917_v3 = vpop.permute.xlu0 %916  ;;  %v1203_v27 = vsel %vm1175_vm8, %v1170_v25, %v923_v33 }
 0x194   : > { %1652 = vst.msk [vmem:[%s2863_s30 + $0x20] sm:$0xf] %vm1643_vm12, %v1619_v9  ;;  %v1479_v40 = vadd.f32 %v2848_v52, %v1443_v34  ;;  %v1449_v28 = vmul.f32 %v2843_v13, %v1378_v17  ;;  %v1197_v56 = vsel %vm1175_vm8, %v1164_v14, %v917_v3 }
 0x195   : > { %v1230_v58 = vsel %vm1208_vm9, %v1197_v56, %v964_v12 }
 0x196   : > { %v1511_v43 = vmax.f32 %v1479_v40, 0.0  ;;  %v1485_v4 = vadd.f32 %v2848_v52, %v1449_v28 }
 0x198   : > { %v1545_v1 = vsel %vm1010_vm3, %v1511_v43, 0.0  ;;  %v1614_v32 = vpack.c.bf16 %v1511_v43, %v1511_v43  ;;  %v2917_v49 = vmax.f32 %v1485_v4, 0.0 }
 0x199   : > { %v1546_v22 = vadd.f32 %v1545_v1, %v1544_v63 }
 0x19a   : > { %1647 = vst.msk [vmem:[%s2863_s30 + $0xc] sm:$0xf] %vm1643_vm12, %v1614_v32  ;;  %v1620_v15 = vpack.c.bf16 %v2917_v49, %v2917_v49  ;;  %v999_v51 = vpop.permute.xlu1 %998 }
 0x19b   : > { %v970_v11 = vpop.permute.xlu0 %969  ;;  %v1263_v2 = vsel %vm1241_vm10, %v1230_v58, %v999_v51 }
 0x19c   : > { %1653 = vst.msk [vmem:[%s2863_s30 + $0x24] sm:$0xf] %vm1643_vm12, %v1620_v15  ;;  %v1236_v47 = vsel %vm1208_vm9, %v1203_v27, %v970_v11  ;;  %1925 = vmatmul.msk.bf16.gmra.mxu2 %vm1310_vm11, %v1263_v2  ;;  %v2022_v2 = vld [vmem:[%s2145_s7 + $0xa8] sm:$0xff] }
 0x19d   : > { %v1269_v20 = vsel %vm1241_vm10, %v1236_v47, %v1005_v61  ;;  %v1040_v47 = vsel %vm1010_vm3, %v2022_v2, %v2500_v60 }
 0x19e   : > { %1928 = vmatmul.msk.bf16.gmra.mxu3 %vm1310_vm11, %v1269_v20 }
 0x1a2   : > { %v1396_v62 = vpop.f32.mrf.mxu2  ;;  %v839_v31 = vpop.permute.xlu1 %838 }
 0x1a3   : > { %v1456_v53 = vmul.f32 %v2843_v13, %v1396_v62  ;;  %v792_v38 = vpop.permute.xlu0 %791 }
 0x1a4   : > { %v1092_v18 = vsel %vm1076_vm5, %v2537_v42, %v792_v38  ;;  %v806_v42 = vpop.permute.xlu2 %805 }
 0x1a5   : > { %v1492_v19 = vadd.f32 %v2848_v52, %v1456_v53  ;;  %v1125_v8 = vsel %vm1109_vm6, %v1092_v18, %v839_v31 }
 0x1a6   : > { %v1158_v46 = vsel %vm1142_vm7, %v1125_v8, %v874_v26 }
 0x1a7   : > { %v2937_v50 = vmax.f32 %v1492_v19, 0.0 }
 0x1a9   : > { %v1627_v41 = vpack.c.bf16 %v2937_v50, %v2937_v50 }
 0x1aa   : > { %v1398_v57 = vpop.f32.mrf.mxu2  ;;  %v958_v0 = vpop.permute.xlu1 %957 }
 0x1ab   : > { %1660 = vst.msk [vmem:[%s2863_s30 + $0x40] sm:$0xf] %vm1643_vm12, %v1627_v41  ;;  %v1457_v12 = vmul.f32 %v2843_v13, %v1398_v57  ;;  %v911_v59 = vpop.permute.xlu0 %910 }
 0x1ac   : > { %v1191_v10 = vsel %vm1175_vm8, %v1158_v46, %v911_v59  ;;  %v882_v23 = vpop.permute.xlu2 %881 }
 0x1ad   : > { %v1493_v55 = vadd.f32 %v2848_v52, %v1457_v12  ;;  %v1224_v44 = vsel %vm1208_vm9, %v1191_v10, %v958_v0 }
 0x1ae   : > { %v1257_v6 = vsel %vm1241_vm10, %v1224_v44, %v993_v37 }
 0x1af   : > { %v2950_v36 = vmax.f32 %v1493_v55, 0.0  ;;  %1922 = vmatmul.msk.bf16.gmra.mxu1 %vm1310_vm11, %v1257_v6 }
 0x1b1   : > { %v1628_v35 = vpack.c.bf16 %v2950_v36, %v2950_v36 }
 0x1b2   : > { %v800_v61 = vpop.permute.xlu1 %799 }
 0x1b3   : > { %1661 = vst.msk [vmem:[%s2863_s30 + $0x44] sm:$0xf] %vm1643_vm12, %v1628_v35  ;;  %v769_v21 = vpop.permute.xlu0 %768 }
 0x1b4   : > { %v925_v24 = vpop.permute.xlu2 %924  ;;  %v1073_v37 = vsel %vm1043_vm2, %v1040_v47, %v769_v21 }
 0x1b5   : > { %v1106_v18 = vsel %vm1076_vm5, %v1073_v37, %v806_v42  ;;  %v2023_v42 = vld [vmem:[%s2145_s7 + $0xb4] sm:$0xff]  ;;  %s1826_s7 = sshll.u32 %s3195_s19, 1 }
 0x1b6   : > { %v1042_v44 = vsel %vm1010_vm3, %v2023_v42, %v2557_v7  ;;  %s281_s13 = sadd.s32 %s1826_s7, %s2138_s25 }
 0x1b7   : > { %s282_s8 = scalar_lea.vmem %s3183_s5, %s281_s13 }
 0x1b9   : > { %v1366_v54 = vpop.f32.mrf.mxu0 }
 0x1ba   : > { %v1444_v45 = vmul.f32 %v2843_v13, %v1366_v54  ;;  %v853_v63 = vpop.permute.xlu1 %852 }
 0x1bb   : > { %v1381_v16 = vpop.f32.mrf.mxu1  ;;  %v847_v29 = vpop.permute.xlu0 %846  ;;  %v1139_v41 = vsel %vm1109_vm6, %v1106_v18, %v853_v63 }
 0x1bc   : > { %v1480_v9 = vadd.f32 %v2848_v52, %v1444_v45  ;;  %v1450_v34 = vmul.f32 %v2843_v13, %v1381_v16  ;;  %v1001_v53 = vpop.permute.xlu2 %1000 }
 0x1be   : > { %v1512_v33 = vmax.f32 %v1480_v9, 0.0  ;;  %v1486_v17 = vadd.f32 %v2848_v52, %v1450_v34 }
 0x1c0   : > { %v1547_v3 = vsel %vm1010_vm3, %v1512_v33, 0.0  ;;  %v1615_v40 = vpack.c.bf16 %v1512_v33, %v1512_v33  ;;  %v2962_v28 = vmax.f32 %v1486_v17, 0.0 }
 0x1c1   : > { %v1548_v39 = vadd.f32 %v1547_v3, %v1546_v22  ;;  %v1368_v14 = vpop.f32.mrf.mxu0  ;;  %v1100_v22 = vsel %vm1076_vm5, %v2645_v48, %v800_v61 }
 0x1c2   : > { %1648 = vst.msk [vmem:[%s2863_s30 + $0x10] sm:$0xf] %vm1643_vm12, %v1615_v40  ;;  %v1621_v43 = vpack.c.bf16 %v2962_v28, %v2962_v28  ;;  %v1445_v4 = vmul.f32 %v2843_v13, %v1368_v14  ;;  %v919_v5 = vpop.permute.xlu1 %918  ;;  %v1133_v58 = vsel %vm1109_vm6, %v1100_v22, %v847_v29 }
 0x1c3   : > { %v1383_v56 = vpop.f32.mrf.mxu1  ;;  %v888_v26 = vpop.permute.xlu0 %887  ;;  %v1166_v48 = vsel %vm1142_vm7, %v1133_v58, %v882_v23 }
 0x1c4   : > { %1654 = vst.msk [vmem:[%s2863_s30 + $0x28] sm:$0xf] %vm1643_vm12, %v1621_v43  ;;  %v1481_v1 = vadd.f32 %v2848_v52, %v1445_v4  ;;  %v1451_v32 = vmul.f32 %v2843_v13, %v1383_v56  ;;  %v1199_v38 = vsel %vm1175_vm8, %v1166_v48, %v919_v5  ;;  %v1172_v57 = vsel %vm1142_vm7, %v1139_v41, %v888_v26  ;;  %v808_v55 = vpop.permute.xlu2 %807 }
 0x1c5   : > { %v1205_v0 = vsel %vm1175_vm8, %v1172_v57, %v925_v24 }
 0x1c6   : > { %v1513_v25 = vmax.f32 %v1481_v1, 0.0  ;;  %v1487_v15 = vadd.f32 %v2848_v52, %v1451_v32 }
 0x1c8   : > { %v1549_v51 = vsel %vm1010_vm3, %v1513_v25, 0.0  ;;  %v1616_v27 = vpack.c.bf16 %v1513_v25, %v1513_v25  ;;  %v2978_v11 = vmax.f32 %v1487_v15, 0.0 }
 0x1c9   : > { %v2983_v20 = vadd.f32 %v1549_v51, %v1548_v39 }
 0x1ca   : > { %1649 = vst.msk [vmem:[%s2863_s30 + $0x14] sm:$0xf] %vm1643_vm12, %v1616_v27  ;;  %v1622_v62 = vpack.c.bf16 %v2978_v11, %v2978_v11  ;;  %v972_v31 = vpop.permute.xlu1 %971 }
 0x1cb   : > { %v966_v19 = vpop.permute.xlu0 %965  ;;  %v1238_v12 = vsel %vm1208_vm9, %v1205_v0, %v972_v31 }
 0x1cc   : > { %1655 = vst.msk [vmem:[%s2863_s30 + $0x2c] sm:$0xf] %vm1643_vm12, %v1622_v62  ;;  %v1232_v60 = vsel %vm1208_vm9, %v1199_v38, %v966_v19  ;;  %v927_v63 = vpop.permute.xlu2 %926 }
 0x1cd   : > { %v1265_v8 = vsel %vm1241_vm10, %v1232_v60, %v1001_v53 }
 0x1ce   : > { %1926 = vmatmul.msk.bf16.gmra.mxu2 %vm1310_vm11, %v1265_v8 }
 0x1d2   : > { %v771_v46 = vpop.permute.xlu1 %770 }
 0x1d3   : > { %v1007_v59 = vpop.permute.xlu0 %1006  ;;  %v1075_v6 = vsel %vm1043_vm2, %v1042_v44, %v771_v46  ;;  %v1555_v44 = vsel %vm1010_vm3, %v2895_v30, 0.0 }
 0x1d4   : > { %v1271_v10 = vsel %vm1241_vm10, %v1238_v12, %v1007_v59  ;;  %v1108_v21 = vsel %vm1076_vm5, %v1075_v6, %v808_v55 }
 0x1d5   : > { %1929 = vmatmul.msk.bf16.gmra.mxu3 %vm1310_vm11, %v1271_v10 }
 0x1da   : > { %v890_v35 = vpop.permute.xlu1 %889 }
 0x1db   : > { %v855_v61 = vpop.permute.xlu0 %854 }
 0x1dc   : > { %v1141_v23 = vsel %vm1109_vm6, %v1108_v21, %v855_v61  ;;  %v1557_v61 = vsel %vm1010_vm3, %v2917_v49, 0.0 }
 0x1dd   : > { %v1174_v45 = vsel %vm1142_vm7, %v1141_v23, %v890_v35  ;;  %v1559_v23 = vsel %vm1010_vm3, %v2962_v28, 0.0 }
 0x1de   : > { %v1207_v33 = vsel %vm1175_vm8, %v1174_v45, %v927_v63  ;;  %v1561_v45 = vsel %vm1010_vm3, %v2978_v11, 0.0 }
 0x1df   : > { %v1401_v54 = vpop.f32.mrf.mxu2 }
 0x1e0   : > { %v1458_v16 = vmul.f32 %v2843_v13, %v1401_v54 }
 0x1e1   : > { %v1416_v29 = vpop.f32.mrf.mxu3 }
 0x1e2   : > { %v1494_v9 = vadd.f32 %v2848_v52, %v1458_v16  ;;  %v1464_v7 = vmul.f32 %v2843_v13, %v1416_v29  ;;  %v1009_v34 = vpop.permute.xlu1 %1008 }
 0x1e3   : > { %v974_v17 = vpop.permute.xlu0 %973 }
 0x1e4   : > { %v3015_v3 = vmax.f32 %v1494_v9, 0.0  ;;  %v1500_v40 = vadd.f32 %v2848_v52, %v1464_v7  ;;  %v1240_v24 = vsel %vm1208_vm9, %v1207_v33, %v974_v17 }
 0x1e5   : > { %v1273_v39 = vsel %vm1241_vm10, %v1240_v24, %v1009_v34 }
 0x1e6   : > { %v1629_v14 = vpack.c.bf16 %v3015_v3, %v3015_v3  ;;  %v3022_v43 = vmax.f32 %v1500_v40, 0.0  ;;  %1930 = vmatmul.msk.bf16.gmra.mxu3 %vm1310_vm11, %v1273_v39 }
 0x1e7   : > { %v1403_v4 = vpop.f32.mrf.mxu2 }
 0x1e8   : > { %1662 = vst.msk [vmem:[%s2863_s30 + $0x48] sm:$0xf] %vm1643_vm12, %v1629_v14  ;;  %v1635_v5 = vpack.c.bf16 %v3022_v43, %v3022_v43  ;;  %v1459_v56 = vmul.f32 %v2843_v13, %v1403_v4 }
 0x1e9   : > { %v1418_v26 = vpop.f32.mrf.mxu3 }
 0x1ea   : > { %1668 = vst.msk [vmem:[%s2863_s30 + $0x60] sm:$0xf] %vm1643_vm12, %v1635_v5  ;;  %v1495_v1 = vadd.f32 %v2848_v52, %v1459_v56  ;;  %v1465_v32 = vmul.f32 %v2843_v13, %v1418_v26 }
 0x1ec   : > { %v3034_v22 = vmax.f32 %v1495_v1, 0.0  ;;  %v1501_v25 = vadd.f32 %v2848_v52, %v1465_v32 }
 0x1ee   : > { %v1630_v15 = vpack.c.bf16 %v3034_v22, %v3034_v22  ;;  %v3039_v58 = vmax.f32 %v1501_v25, 0.0 }
 0x1f0   : > { %1663 = vst.msk [vmem:[%s2863_s30 + $0x4c] sm:$0xf] %vm1643_vm12, %v1630_v15  ;;  %v1636_v51 = vpack.c.bf16 %v3039_v58, %v3039_v58 }
 0x1f2   : > { %1669 = vst.msk [vmem:[%s2863_s30 + $0x64] sm:$0xf] %vm1643_vm12, %v1636_v51 }
 0x1f9   : > { %v1371_v27 = vpop.f32.mrf.mxu0 }
 0x1fa   : > { %v1446_v2 = vmul.f32 %v2843_v13, %v1371_v27 }
 0x1fb   : > { %v1386_v47 = vpop.f32.mrf.mxu1 }
 0x1fc   : > { %v1482_v37 = vadd.f32 %v2848_v52, %v1446_v2  ;;  %v1452_v48 = vmul.f32 %v2843_v13, %v1386_v47 }
 0x1fe   : > { %v1514_v62 = vmax.f32 %v1482_v37, 0.0  ;;  %v1488_v31 = vadd.f32 %v2848_v52, %v1452_v48 }
 0x200   : > { %v1551_v53 = vsel %vm1010_vm3, %v1514_v62, 0.0  ;;  %v1617_v38 = vpack.c.bf16 %v1514_v62, %v1514_v62  ;;  %v1520_v19 = vmax.f32 %v1488_v31, 0.0 }
 0x201   : > { %v1552_v60 = vadd.f32 %v1551_v53, %v2983_v20  ;;  %v1373_v18 = vpop.f32.mrf.mxu0 }
 0x202   : > { %1650 = vst.msk [vmem:[%s2863_s30 + $0x18] sm:$0xf] %vm1643_vm12, %v1617_v38  ;;  %v1623_v8 = vpack.c.bf16 %v1520_v19, %v1520_v19  ;;  %v1447_v41 = vmul.f32 %v2843_v13, %v1373_v18  ;;  %v1563_v30 = vsel %vm1010_vm3, %v1520_v19, 0.0 }
 0x203   : > { %v1388_v57 = vpop.f32.mrf.mxu1 }
 0x204   : > { %1656 = vst.msk [vmem:[%s2863_s30 + $0x30] sm:$0xf] %vm1643_vm12, %v1623_v8  ;;  %v1483_v0 = vadd.f32 %v2848_v52, %v1447_v41  ;;  %v1453_v46 = vmul.f32 %v2843_v13, %v1388_v57  ;;  %v1571_v57 = vsel %vm1010_vm3, %v2937_v50, 0.0 }
 0x206   : > { %v1515_v12 = vmax.f32 %v1483_v0, 0.0  ;;  %v1489_v59 = vadd.f32 %v2848_v52, %v1453_v46  ;;  %v1573_v46 = vsel %vm1010_vm3, %v2950_v36, 0.0 }
 0x208   : > { %v1553_v20 = vsel %vm1010_vm3, %v1515_v12, 0.0  ;;  %v1618_v10 = vpack.c.bf16 %v1515_v12, %v1515_v12  ;;  %v1521_v55 = vmax.f32 %v1489_v59, 0.0  ;;  %v1575_v59 = vsel %vm1010_vm3, %v3015_v3, 0.0 }
 0x209   : > { %v1554_v42 = vadd.f32 %v1553_v20, %v1552_v60 }
 0x20a   : > { %1651 = vst.msk [vmem:[%s2863_s30 + $0x1c] sm:$0xf] %vm1643_vm12, %v1618_v10  ;;  %v1624_v6 = vpack.c.bf16 %v1521_v55, %v1521_v55  ;;  %v1565_v29 = vsel %vm1010_vm3, %v1521_v55, 0.0  ;;  %v1577_v10 = vsel %vm1010_vm3, %v3034_v22, 0.0 }
 0x20b   : > { %v1556_v35 = vadd.f32 %v1555_v44, %v1554_v42 }
 0x20c   : > { %1657 = vst.msk [vmem:[%s2863_s30 + $0x34] sm:$0xf] %vm1643_vm12, %v1624_v6 }
 0x20d   : > { %v1558_v21 = vadd.f32 %v1557_v61, %v1556_v35 }
 0x20f   : > { %v1560_v54 = vadd.f32 %v1559_v23, %v1558_v21 }
 0x211   : > { %v1562_v63 = vadd.f32 %v1561_v45, %v1560_v54 }
 0x213   : > { %v1564_v16 = vadd.f32 %v1563_v30, %v1562_v63 }
 0x215   : > { %v1566_v9 = vadd.f32 %v1565_v29, %v1564_v16 }
 0x21f   : > { %v1406_v49 = vpop.f32.mrf.mxu2 }
 0x220   : > { %v1460_v7 = vmul.f32 %v2843_v13, %v1406_v49 }
 0x221   : > { %v1421_v34 = vpop.f32.mrf.mxu3 }
 0x222   : > { %v1496_v33 = vadd.f32 %v2848_v52, %v1460_v7  ;;  %v1466_v28 = vmul.f32 %v2843_v13, %v1421_v34 }
 0x224   : > { %v1528_v17 = vmax.f32 %v1496_v33, 0.0  ;;  %v1502_v11 = vadd.f32 %v2848_v52, %v1466_v28 }
 0x226   : > { %v1631_v40 = vpack.c.bf16 %v1528_v17, %v1528_v17  ;;  %v3080_v24 = vmax.f32 %v1502_v11, 0.0  ;;  %v1579_v35 = vsel %vm1010_vm3, %v1528_v17, 0.0 }
 0x227   : > { %v1408_v39 = vpop.f32.mrf.mxu2 }
 0x228   : > { %1664 = vst.msk [vmem:[%s2863_s30 + $0x50] sm:$0xf] %vm1643_vm12, %v1631_v40  ;;  %v1637_v14 = vpack.c.bf16 %v3080_v24, %v3080_v24  ;;  %v1461_v4 = vmul.f32 %v2843_v13, %v1408_v39  ;;  %v1587_v40 = vsel %vm1010_vm3, %v3022_v43, 0.0 }
 0x229   : > { %v1423_v5 = vpop.f32.mrf.mxu3 }
 0x22a   : > { %1670 = vst.msk [vmem:[%s2863_s30 + $0x68] sm:$0xf] %vm1643_vm12, %v1637_v14  ;;  %v1497_v56 = vadd.f32 %v2848_v52, %v1461_v4  ;;  %v1467_v26 = vmul.f32 %v2843_v13, %v1423_v5  ;;  %v1589_v4 = vsel %vm1010_vm3, %v3039_v58, 0.0 }
 0x22c   : > { %v1529_v1 = vmax.f32 %v1497_v56, 0.0  ;;  %v1503_v32 = vadd.f32 %v2848_v52, %v1467_v26  ;;  %v1391_v25 = vpop.f32.mrf.mxu1  ;;  %v1591_v26 = vsel %vm1010_vm3, %v3080_v24, 0.0 }
 0x22d   : > { %v1454_v15 = vmul.f32 %v2843_v13, %v1391_v25 }
 0x22e   : > { %v1632_v51 = vpack.c.bf16 %v1529_v1, %v1529_v1  ;;  %v3093_v27 = vmax.f32 %v1503_v32, 0.0  ;;  %v1581_v45 = vsel %vm1010_vm3, %v1529_v1, 0.0 }
 0x22f   : > { %v1490_v2 = vadd.f32 %v2848_v52, %v1454_v15 }
 0x230   : > { %1665 = vst.msk [vmem:[%s2863_s30 + $0x54] sm:$0xf] %vm1643_vm12, %v1632_v51  ;;  %v1638_v47 = vpack.c.bf16 %v3093_v27, %v3093_v27  ;;  %v1593_v25 = vsel %vm1010_vm3, %v3093_v27, 0.0 }
 0x231   : > { %v1522_v37 = vmax.f32 %v1490_v2, 0.0 }
 0x232   : > { %1671 = vst.msk [vmem:[%s2863_s30 + $0x6c] sm:$0xf] %vm1643_vm12, %v1638_v47 }
 0x233   : > { %v1625_v48 = vpack.c.bf16 %v1522_v37, %v1522_v37  ;;  %v1567_v53 = vsel %vm1010_vm3, %v1522_v37, 0.0 }
 0x234   : > { %v1393_v62 = vpop.f32.mrf.mxu1  ;;  %v1568_v60 = vadd.f32 %v1567_v53, %v1566_v9 }
 0x235   : > { %1658 = vst.msk [vmem:[%s2863_s30 + $0x38] sm:$0xf] %vm1643_vm12, %v1625_v48  ;;  %v1455_v31 = vmul.f32 %v2843_v13, %v1393_v62 }
 0x237   : > { %v1491_v38 = vadd.f32 %v2848_v52, %v1455_v31 }
 0x239   : > { %v1523_v19 = vmax.f32 %v1491_v38, 0.0 }
 0x23b   : > { %v1569_v18 = vsel %vm1010_vm3, %v1523_v19, 0.0  ;;  %v1626_v8 = vpack.c.bf16 %v1523_v19, %v1523_v19 }
 0x23c   : > { %v1570_v41 = vadd.f32 %v1569_v18, %v1568_v60 }
 0x23d   : > { %1659 = vst.msk [vmem:[%s2863_s30 + $0x3c] sm:$0xf] %vm1643_vm12, %v1626_v8 }
 0x23e   : > { %v1572_v0 = vadd.f32 %v1571_v57, %v1570_v41 }
 0x240   : > { %v1574_v12 = vadd.f32 %v1573_v46, %v1572_v0 }
 0x242   : > { %v1576_v20 = vadd.f32 %v1575_v59, %v1574_v12 }
 0x244   : > { %v1578_v55 = vadd.f32 %v1577_v10, %v1576_v20 }
 0x246   : > { %v1580_v21 = vadd.f32 %v1579_v35, %v1578_v55 }
 0x248   : > { %v1582_v16 = vadd.f32 %v1581_v45, %v1580_v21 }
 0x251   : > { %v1411_v42 = vpop.f32.mrf.mxu2 }
 0x252   : > { %v1462_v44 = vmul.f32 %v2843_v13, %v1411_v42 }
 0x254   : > { %v1498_v50 = vadd.f32 %v2848_v52, %v1462_v44 }
 0x256   : > { %v1530_v6 = vmax.f32 %v1498_v50, 0.0 }
 0x258   : > { %v1633_v61 = vpack.c.bf16 %v1530_v6, %v1530_v6  ;;  %v1426_v36 = vpop.f32.mrf.mxu3  ;;  %v1583_v63 = vsel %vm1010_vm3, %v1530_v6, 0.0 }
 0x259   : > { %v1468_v23 = vmul.f32 %v2843_v13, %v1426_v36  ;;  %v1413_v3 = vpop.f32.mrf.mxu2  ;;  %v1584_v49 = vadd.f32 %v1583_v63, %v1582_v16 }
 0x25a   : > { %1666 = vst.msk [vmem:[%s2863_s30 + $0x58] sm:$0xf] %vm1643_vm12, %v1633_v61  ;;  %v1463_v22 = vmul.f32 %v2843_v13, %v1413_v3 }
 0x25b   : > { %v1504_v54 = vadd.f32 %v2848_v52, %v1468_v23 }
 0x25c   : > { %v1499_v30 = vadd.f32 %v2848_v52, %v1463_v22 }
 0x25d   : > { %v1536_v29 = vmax.f32 %v1504_v54, 0.0 }
 0x25e   : > { %v1531_v9 = vmax.f32 %v1499_v30, 0.0 }
 0x25f   : > { %v1639_v7 = vpack.c.bf16 %v1536_v29, %v1536_v29  ;;  %v1595_v47 = vsel %vm1010_vm3, %v1536_v29, 0.0 }
 0x260   : > { %v1585_v34 = vsel %vm1010_vm3, %v1531_v9, 0.0  ;;  %v1634_v33 = vpack.c.bf16 %v1531_v9, %v1531_v9  ;;  %v1428_v28 = vpop.f32.mrf.mxu3 }
 0x261   : > { %1672 = vst.msk [vmem:[%s2863_s30 + $0x70] sm:$0xf] %vm1643_vm12, %v1639_v7  ;;  %v1586_v17 = vadd.f32 %v1585_v34, %v1584_v49  ;;  %v1469_v11 = vmul.f32 %v2843_v13, %v1428_v28 }
 0x262   : > { %1667 = vst.msk [vmem:[%s2863_s30 + $0x5c] sm:$0xf] %vm1643_vm12, %v1634_v33 }
 0x263   : > { %v1588_v39 = vadd.f32 %v1587_v40, %v1586_v17  ;;  %v1505_v14 = vadd.f32 %v2848_v52, %v1469_v11 }
 0x265   : > { %v1590_v5 = vadd.f32 %v1589_v4, %v1588_v39  ;;  %v1537_v56 = vmax.f32 %v1505_v14, 0.0 }
 0x267   : > { %v1592_v1 = vadd.f32 %v1591_v26, %v1590_v5  ;;  %v1640_v32 = vpack.c.bf16 %v1537_v56, %v1537_v56  ;;  %v1597_v62 = vsel %vm1010_vm3, %v1537_v56, 0.0 }
 0x269   : > { %v1594_v43 = vadd.f32 %v1593_v25, %v1592_v1  ;;  %1673 = vst.msk [vmem:[%s2863_s30 + $0x74] sm:$0xf] %vm1643_vm12, %v1640_v32  ;;  %v1431_v15 = vpop.f32.mrf.mxu3 }
 0x26a   : > { %v1470_v51 = vmul.f32 %v2843_v13, %v1431_v15 }
 0x26b   : > { %v1596_v48 = vadd.f32 %v1595_v47, %v1594_v43 }
 0x26c   : > { %v1506_v2 = vadd.f32 %v2848_v52, %v1470_v51 }
 0x26d   : > { %v1598_v38 = vadd.f32 %v1597_v62, %v1596_v48 }
 0x26e   : > { %v1538_v58 = vmax.f32 %v1506_v2, 0.0 }
 0x270   : > { %v1641_v37 = vpack.c.bf16 %v1538_v58, %v1538_v58  ;;  %v1599_v31 = vsel %vm1010_vm3, %v1538_v58, 0.0 }
 0x271   : > { %v1433_v24 = vpop.f32.mrf.mxu3  ;;  %v1600_v60 = vadd.f32 %v1599_v31, %v1598_v38 }
 0x272   : > { %1674 = vst.msk [vmem:[%s2863_s30 + $0x78] sm:$0xf] %vm1643_vm12, %v1641_v37  ;;  %v1471_v27 = vmul.f32 %v2843_v13, %v1433_v24 }
 0x274   : > { %v1507_v53 = vadd.f32 %v2848_v52, %v1471_v27 }
 0x276   : > { %v1539_v19 = vmax.f32 %v1507_v53, 0.0 }
 0x278   : > { %v1601_v18 = vsel %vm1010_vm3, %v1539_v19, 0.0  ;;  %v1642_v8 = vpack.c.bf16 %v1539_v19, %v1539_v19 }
 0x279   : > { %v1602_v41 = vadd.f32 %v1601_v18, %v1600_v60 }
 0x27a   : > { %1675 = vst.msk [vmem:[%s2863_s30 + $0x7c] sm:$0xf] %vm1643_vm12, %v1642_v8 }
 0x27b   : > { %v1603_v57 = vrot.slane %v1602_v41, 4 }
 0x27d   : > { %v1604_v0 = vadd.f32 %v1603_v57, %v1602_v41 }
 0x27f   : > { %v1605_v46 = vrot.slane %v1604_v0, 2 }
 0x281   : > { %v1606_v13 = vadd.f32 %v1605_v46, %v1604_v0 }
 0x283   : > { %v1607_v12 = vrot.slane %v1606_v13, 1 }
 0x285   : > { %v1608_v52 = vadd.f32 %v1607_v12, %v1606_v13 }
 0x287   : > { %1610 = vst.msk [vmem:[%s282_s8] sm:$0x1] %vm1609_vm13, %v1608_v52 }
 0x288 PF: > { %s16_s22 = sadd.s32 1, %s2062_s22   ;;  %s3184_s18 = smov %s2054_s20 }
 0x289   : > { %p13_p8 = scmp.ge.s32.totalorder %s16_s22, 6   ;;  %s3185_s19 = smov %s2058_s21 }
 0x28a   : > { %s3186_s20 = smov %s3189_s23  ;;  %s3187_s21 = smov %s3193_s24 }
 0x28b   :  { %15 = sbr.rel (!%p13_p8) target bundleno = 3 (0x3), region = 78 }

</bundles_post_ra>
